<compile_context>
chip_gen: v7x
topology: tpu7x:2x2x1
jax: 0.10.0
libtpu: 0.0.40
codegen_flags: <defaults>
</compile_context>

<pallas_src>
import functools

import jax
import jax.numpy as jnp
from jax import lax
from jax.experimental import pallas as pl
from jax.experimental.pallas import tpu as pltpu

EPS = 1e-5          # nn.BatchNorm2d default eps
NEG_SLOPE = 0.1     # nn.LeakyReLU(0.1)


def _lrelu(y):
    return jnp.where(y > 0, y, NEG_SLOPE * y)


# ---------------------------------------------------------------------------
# Fused per-repeat kernel
# ---------------------------------------------------------------------------
def _repeat_kernel(xt_ref, xc_ref, xb_ref, w1_ref, s1_ref, b1_ref,
                   w2_ref, s2_ref, b2_ref, o_ref, z_ref, *, use_residual):
    """One ResidualBlock repeat on a (TH, W, C) row tile of one image.

    xt/xb_ref: (1, 1, W, C)  clamped halo rows (auto-pipelined)
    xc_ref:    (1, TH, W, C) center rows (auto-pipelined; doubles as residual)
    w1_ref:    (C, Cmid)     conv1 weights (compute dtype)
    w2_ref:    (3, 3*Cmid, C) conv2 weights, layout [ky][kx*Cmid + ci, co]
    s*/b*:     (1, Cmid|C)   folded BN scale / bias (f32)
    o_ref:     (1, TH, W, C)
    z_ref:     (TH+2, W, 3*Cmid) VMEM scratch (conv2 operand, compute dtype)
    """
    hb = pl.program_id(1)
    last = pl.num_programs(1) - 1
    _, TH, W, C = xc_ref.shape
    Cmid = w1_ref.shape[1]
    cdt = w1_ref.dtype

    def conv1(x2d):                       # (M, C) -> (M, Cmid) f32
        t = jnp.dot(x2d.astype(cdt), w1_ref[...],
                    preferred_element_type=jnp.float32)
        return _lrelu(t * s1_ref[...] + b1_ref[...])

    def put_taps(r0, r1, m_rows):
        """Rows [r0, r1) of z: z[r, c, kx*Cmid+ci] = m[r, c-1+kx] (0 outside)."""
        rows = r1 - r0
        zc = jnp.zeros((rows, 1, Cmid), jnp.float32)
        z_ref[r0:r1, :, Cmid:2 * Cmid] = m_rows.astype(cdt)
        z_ref[r0:r1, :, 0:Cmid] = jnp.concatenate(                 # m[., c-1]
            [zc, m_rows[:, :W - 1, :]], axis=1).astype(cdt)
        z_ref[r0:r1, :, 2 * Cmid:3 * Cmid] = jnp.concatenate(      # m[., c+1]
            [m_rows[:, 1:, :], zc], axis=1).astype(cdt)

    # -- conv1x1 + BN + LeakyReLU (MXU, f32 accumulation) --------------------
    xc = xc_ref[0]                                            # (TH, W, C)
    m_c = conv1(xc.reshape(TH * W, C)).reshape(TH, W, Cmid)
    m_h = conv1(jnp.concatenate([xt_ref[0], xb_ref[0]], axis=0)
                .reshape(2 * W, C)).reshape(2, W, Cmid)
    # Border halo rows reproduce the 3x3 conv's zero padding.
    m_t = jnp.where(hb == 0, 0.0, m_h[0:1])
    m_b = jnp.where(hb == last, 0.0, m_h[1:2])

    put_taps(0, 1, m_t)
    put_taps(1, TH + 1, m_c)
    put_taps(TH + 1, TH + 2, m_b)

    # -- conv3x3 as 3 MXU matmuls over ky with K = 3*Cmid ---------------------
    acc = jnp.dot(z_ref[0:TH].reshape(TH * W, 3 * Cmid), w2_ref[0],
                  preferred_element_type=jnp.float32)
    for ky in (1, 2):
        acc = acc + jnp.dot(z_ref[ky:ky + TH].reshape(TH * W, 3 * Cmid),
                            w2_ref[ky], preferred_element_type=jnp.float32)

    # -- epilogue in f32: folded BN, LeakyReLU, residual add, store ----------
    y = _lrelu(acc * s2_ref[...] + b2_ref[...]).reshape(TH, W, C)
    if use_residual:
        y = y + xc.astype(jnp.float32)
    o_ref[0] = y.astype(o_ref.dtype)


# ---------------------------------------------------------------------------
# Generation-aware sizing helpers
# ---------------------------------------------------------------------------
@functools.lru_cache(maxsize=None)
def _vmem_capacity_bytes():
    try:
        cap = int(pltpu.get_tpu_info().vmem_capacity_bytes)
        if cap >= (8 << 20):
            return cap
    except Exception:
        pass
    kind = jax.devices()[0].device_kind.lower()
    return (64 << 20) if ("v7" in kind or "7x" in kind) else (128 << 20)


def _pick_tile_h(H, W, C, act_bytes, w_bytes, vmem_limit, n_batch):
    """Largest row tile whose per-step VMEM footprint fits ~60% of the limit."""
    Cmid = C // 2

    def need(th):
        blocks = 2 * 2 * th * W * C * act_bytes            # in + out (double buf)
        halos = 2 * 2 * 2 * W * C * act_bytes               # two 1-row halo blocks
        weights = 2 * (C * Cmid + 9 * Cmid * C) * w_bytes + 8 * (Cmid + C) * 4
        z = (th + 2) * W * 3 * Cmid * w_bytes                # conv2 operand scratch
        temps = 3 * (th + 2) * W * Cmid * 4 + 2 * th * W * C * 4
        return blocks + halos + weights + z + temps

    budget = int(0.6 * vmem_limit)
    divisors = [d for d in range(1, H + 1) if H % d == 0]
    fitting = [d for d in divisors if need(d) <= budget] or [1]
    # Prefer 8..64 rows (halo overhead <= ~25%, bounded VMEM); fall back to
    # whatever fits (handles e.g. prime H by taking the whole image).
    good = [d for d in fitting if 8 <= d <= 64] or fitting
    if n_batch == 1:                       # keep >= 2 grid steps for megacore
        two_plus = [d for d in good if H // d >= 2]
        good = two_plus or good
    return max(good)


# ---------------------------------------------------------------------------
# pallas_call wrapper for one repeat
# ---------------------------------------------------------------------------
def _fused_repeat(x, w1, s1, b1, w2, s2, b2, *, use_residual, tile_h):
    N, H, W, C = x.shape
    Cmid = w1.shape[1]
    act_bytes = jnp.dtype(x.dtype).itemsize
    w_bytes = jnp.dtype(w1.dtype).itemsize

    vmem_cap = _vmem_capacity_bytes()
    # ~48 MiB on v7x (64 MiB physical), ~96 MiB on v5e/v6e (128 MiB physical)
    vmem_limit = int(min((vmem_cap * 3) // 4, 100 << 20))

    if tile_h is None:
        th = _pick_tile_h(H, W, C, act_bytes, w_bytes, vmem_limit, N)
    else:
        th = max(1, min(tile_h, H))
        while H % th:
            th -= 1
    nhb = H // th

    kern = functools.partial(_repeat_kernel, use_residual=use_residual)
    return pl.pallas_call(
        kern,
        out_shape=jax.ShapeDtypeStruct((N, H, W, C), x.dtype),
        grid=(N, nhb),
        in_specs=[
            # x passed three times: 1-row top halo, TH center rows, 1-row
            # bottom halo. Halo row indices clamp at the border; those rows
            # are zero-masked after conv1 (conv2's zero padding).
            pl.BlockSpec((1, 1, W, C),
                         lambda n, h: (n, jnp.maximum(h * th - 1, 0), 0, 0)),
            pl.BlockSpec((1, th, W, C), lambda n, h: (n, h, 0, 0)),
            pl.BlockSpec((1, 1, W, C),
                         lambda n, h: (n, jnp.minimum(h * th + th, H - 1), 0, 0)),
            pl.BlockSpec((C, Cmid), lambda n, h: (0, 0)),            # w1
            pl.BlockSpec((1, Cmid), lambda n, h: (0, 0)),            # s1
            pl.BlockSpec((1, Cmid), lambda n, h: (0, 0)),            # b1
            pl.BlockSpec((3, 3 * Cmid, C), lambda n, h: (0, 0, 0)),  # w2
            pl.BlockSpec((1, C), lambda n, h: (0, 0)),               # s2
            pl.BlockSpec((1, C), lambda n, h: (0, 0)),               # b2
        ],
        out_specs=pl.BlockSpec((1, th, W, C), lambda n, h: (n, h, 0, 0)),
        scratch_shapes=[pltpu.VMEM((th + 2, W, 3 * Cmid), w1.dtype)],
        compiler_params=pltpu.CompilerParams(
            dimension_semantics=("parallel", "parallel"),
            vmem_limit_bytes=vmem_limit),
    )(x, x, x, w1, s1, b1, w2, s2, b2)


# ---------------------------------------------------------------------------
# Parameter setup, BN folding, forward
# ---------------------------------------------------------------------------
def init_params(key, channels, num_repeats):
    mid = channels // 2
    params = []
    for _ in range(num_repeats):
        keys = jax.random.split(key, 13)
        key = keys[0]
        p = dict(
            # conv1: 1x1, C -> C/2 (PyTorch OIHW), with bias
            w1=0.1 * jax.random.normal(keys[1], (mid, channels, 1, 1), jnp.float32),
            b1=0.05 * jax.random.normal(keys[2], (mid,), jnp.float32),
            g1=jax.random.uniform(keys[3], (mid,), jnp.float32, 0.5, 1.5),
            be1=0.1 * jax.random.normal(keys[4], (mid,), jnp.float32),
            m1=0.1 * jax.random.normal(keys[5], (mid,), jnp.float32),
            v1=jax.random.uniform(keys[6], (mid,), jnp.float32, 0.5, 1.5),
            # conv2: 3x3, C/2 -> C (padding=1), with bias
            w2=0.1 * jax.random.normal(keys[7], (channels, mid, 3, 3), jnp.float32),
            b2=0.05 * jax.random.normal(keys[8], (channels,), jnp.float32),
            g2=jax.random.uniform(keys[9], (channels,), jnp.float32, 0.5, 1.5),
            be2=0.1 * jax.random.normal(keys[10], (channels,), jnp.float32),
            m2=0.1 * jax.random.normal(keys[11], (channels,), jnp.float32),
            v2=jax.random.uniform(keys[12], (channels,), jnp.float32, 0.5, 1.5),
        )
        params.append(p)
    return params


def _fold_bn(conv_b, gamma, beta, mean, var):
    scale = gamma / jnp.sqrt(var + EPS)
    bias = (conv_b - mean) * scale + beta
    return (scale.reshape(1, -1).astype(jnp.float32),
            bias.reshape(1, -1).astype(jnp.float32))


@functools.partial(jax.jit, static_argnames=("use_residual", "compute_dtype",
                                              "act_dtype", "tile_h"))
def residual_block_forward(x_nchw, params, use_residual=True,
                           compute_dtype=jnp.bfloat16,
                           act_dtype=jnp.float32, tile_h=None):
    """NCHW in / NCHW out, matching the PyTorch module."""
    x = jnp.transpose(x_nchw, (0, 2, 3, 1)).astype(act_dtype)   # -> NHWC
    N, H, W, C = x.shape
    for p in params:
        mid = p["w1"].shape[0]
        # conv1 weights -> (Cin, Cmid), compute dtype
        w1k = p["w1"].reshape(mid, C).T.astype(compute_dtype)
        s1, b1 = _fold_bn(p["b1"], p["g1"], p["be1"], p["m1"], p["v1"])
        # conv2 weights OIHW -> (ky, kx*Cmid + ci, co)
        w2k = jnp.transpose(p["w2"], (2, 3, 1, 0)).reshape(3, 3 * mid, C)
        w2k = w2k.astype(compute_dtype)
        s2, b2 = _fold_bn(p["b2"], p["g2"], p["be2"], p["m2"], p["v2"])
        x = _fused_repeat(x, w1k, s1, b1, w2k, s2, b2,
                          use_residual=use_residual, tile_h=tile_h)
    return jnp.transpose(x, (0, 3, 1, 2)).astype(jnp.float32)   # -> NCHW


# ---------------------------------------------------------------------------
# Pure-JAX reference (for verification)
# ---------------------------------------------------------------------------
def reference_forward(x, params, use_residual=True):
    dn = ("NCHW", "OIHW", "NCHW")

    def bn(y, g, be, m, v):
        return ((y - m[None, :, None, None])
                * (g / jnp.sqrt(v + EPS))[None, :, None, None]
                + be[None, :, None, None])

    for p in params:
        res = x
        y = lax.conv_general_dilated(x, p["w1"], (1, 1), "VALID",
                                     dimension_numbers=dn,
                                     precision=lax.Precision.HIGHEST)
        y = y + p["b1"][None, :, None, None]
        y = bn(y, p["g1"], p["be1"], p["m1"], p["v1"])
        y = jnp.where(y > 0, y, NEG_SLOPE * y)
        y = lax.conv_general_dilated(y, p["w2"], (1, 1), ((1, 1), (1, 1)),
                                     dimension_numbers=dn,
                                     precision=lax.Precision.HIGHEST)
        y = y + p["b2"][None, :, None, None]
        y = bn(y, p["g2"], p["be2"], p["m2"], p["v2"])
        y = jnp.where(y > 0, y, NEG_SLOPE * y)
        x = y + res if use_residual else y
    return x


if __name__ == "__main__":
    # Small but lane-dense shapes (C=128 keeps output stores at 128 lanes).
    N, C, H, W = 2, 128, 16, 16
    num_repeats = 2

    key = jax.random.PRNGKey(0)
    kx_, kp = jax.random.split(key)
    x = jax.random.normal(kx_, (N, C, H, W), jnp.float32)    # NCHW like PyTorch
    params = init_params(kp, C, num_repeats)

    ref = reference_forward(x, params, use_residual=True)

    # 1) f32 compute + f32 activations; tile_h=8 forces two row tiles so both
    #    boundary and interior halo paths are exercised.
    out_f32 = residual_block_forward(x, params, use_residual=True,
                                     compute_dtype=jnp.float32,
                                     act_dtype=jnp.float32, tile_h=8)
    out_f32 = jax.block_until_ready(out_f32)
    assert out_f32.shape == ref.shape == (N, C, H, W)
    assert jnp.allclose(out_f32, ref, atol=2e-3, rtol=2e-3), (
        float(jnp.max(jnp.abs(out_f32 - ref))))

    # use_residual=False specialization (no residual add), f32 check.
    ref_nr = reference_forward(x, params, use_residual=False)
    out_nr = residual_block_forward(x, params, use_residual=False,
                                    compute_dtype=jnp.float32,
                                    act_dtype=jnp.float32, tile_h=8)
    out_nr = jax.block_until_ready(out_nr)
    assert jnp.allclose(out_nr, ref_nr, atol=2e-3, rtol=2e-3), (
        float(jnp.max(jnp.abs(out_nr - ref_nr))))

    # 2) Performance configuration: bf16 MXU inputs + bf16 inter-repeat
    #    activations, auto-sized row tile and generation-aware VMEM limit.
    out_perf = residual_block_forward(x, params, use_residual=True,
                                      compute_dtype=jnp.bfloat16,
                                      act_dtype=jnp.bfloat16, tile_h=None)
    out_perf = jax.block_until_ready(out_perf)
    rel = jnp.sqrt(jnp.mean((out_perf - ref) ** 2) / jnp.mean(ref ** 2))
    assert float(rel) < 5e-2, float(rel)

    print("KERNEL_OK")
</pallas_src>

<mosaic_0001>
module attributes {stable_mosaic.version = 11 : i64} {
  func.func @_repeat_kernel(%arg0: i32, %arg1: i32, %arg2: memref<1x1x16x128xf32, #tpu.memory_space<vmem>>, %arg3: memref<1x8x16x128xf32, #tpu.memory_space<vmem>>, %arg4: memref<1x1x16x128xf32, #tpu.memory_space<vmem>>, %arg5: memref<128x64xf32, #tpu.memory_space<vmem>>, %arg6: memref<1x64xf32, #tpu.memory_space<vmem>>, %arg7: memref<1x64xf32, #tpu.memory_space<vmem>>, %arg8: memref<3x192x128xf32, #tpu.memory_space<vmem>>, %arg9: memref<1x128xf32, #tpu.memory_space<vmem>>, %arg10: memref<1x128xf32, #tpu.memory_space<vmem>>, %arg11: memref<1x8x16x128xf32, #tpu.memory_space<vmem>>, %arg12: memref<10x16x192xf32, #tpu.memory_space<vmem>>) attributes {dimension_semantics = [#tpu.dimension_semantics<parallel>, #tpu.dimension_semantics<parallel>], iteration_bounds = array<i64: 2, 2>, scalar_prefetch = 0 : i64, scratch_operands = 1 : i64, tpu.core_type = #tpu.core_type<tc>, window_params = [{transform_indices = @transform_0, window_bounds = array<i64: 1, 1, 16, 128>}, {transform_indices = @transform_1, window_bounds = array<i64: 1, 8, 16, 128>}, {transform_indices = @transform_2, window_bounds = array<i64: 1, 1, 16, 128>}, {pipeline_mode = #tpu.pipeline_mode<synchronous>, transform_indices = @transform_3, window_bounds = array<i64: 128, 64>}, {pipeline_mode = #tpu.pipeline_mode<synchronous>, transform_indices = @transform_4, window_bounds = array<i64: 1, 64>}, {pipeline_mode = #tpu.pipeline_mode<synchronous>, transform_indices = @transform_5, window_bounds = array<i64: 1, 64>}, {pipeline_mode = #tpu.pipeline_mode<synchronous>, transform_indices = @transform_6, window_bounds = array<i64: 3, 192, 128>}, {pipeline_mode = #tpu.pipeline_mode<synchronous>, transform_indices = @transform_7, window_bounds = array<i64: 1, 128>}, {pipeline_mode = #tpu.pipeline_mode<synchronous>, transform_indices = @transform_8, window_bounds = array<i64: 1, 128>}, {transform_indices = @transform_9, window_bounds = array<i64: 1, 8, 16, 128>}]} {
    %c0 = arith.constant 0 : index
    %c0_0 = arith.constant 0 : index
    %c0_1 = arith.constant 0 : index
    %c0_2 = arith.constant 0 : index
    %0 = vector.load %arg3[%c0, %c0_0, %c0_1, %c0_2] : memref<1x8x16x128xf32, #tpu.memory_space<vmem>>, vector<1x8x16x128xf32>
    %1 = vector.shape_cast %0 : vector<1x8x16x128xf32> to vector<8x16x128xf32>
    %2 = vector.shape_cast %1 : vector<8x16x128xf32> to vector<128x128xf32>
    %c0_3 = arith.constant 0 : index
    %c0_4 = arith.constant 0 : index
    %3 = vector.load %arg5[%c0_3, %c0_4] : memref<128x64xf32, #tpu.memory_space<vmem>>, vector<128x64xf32>
    %cst = arith.constant dense<0.000000e+00> : vector<128x64xf32>
    %4 = tpu.matmul %2, %3, %cst {dimension_numbers = #tpu.dot_dimension_numbers<[1], [0], [0], [1], [0, 0, 1, 1], [], []>} : vector<128x128xf32>, vector<128x64xf32>, vector<128x64xf32> -> vector<128x64xf32>
    %c0_5 = arith.constant 0 : index
    %c0_6 = arith.constant 0 : index
    %5 = vector.load %arg6[%c0_5, %c0_6] : memref<1x64xf32, #tpu.memory_space<vmem>>, vector<1x64xf32>
    %6 = vector.broadcast %5 : vector<1x64xf32> to vector<128x64xf32>
    %7 = arith.mulf %4, %6 : vector<128x64xf32>
    %c0_7 = arith.constant 0 : index
    %c0_8 = arith.constant 0 : index
    %8 = vector.load %arg7[%c0_7, %c0_8] : memref<1x64xf32, #tpu.memory_space<vmem>>, vector<1x64xf32>
    %9 = vector.broadcast %8 : vector<1x64xf32> to vector<128x64xf32>
    %10 = arith.addf %7, %9 : vector<128x64xf32>
    %cst_9 = arith.constant 0.000000e+00 : f32
    %11 = vector.broadcast %cst_9 : f32 to vector<128x64xf32>
    %12 = arith.cmpf ogt, %10, %11 : vector<128x64xf32>
    %cst_10 = arith.constant 1.000000e-01 : f32
    %13 = vector.broadcast %cst_10 : f32 to vector<128x64xf32>
    %14 = arith.mulf %13, %10 : vector<128x64xf32>
    %15 = arith.select %12, %10, %14 : vector<128x64xi1>, vector<128x64xf32>
    %16 = vector.shape_cast %15 : vector<128x64xf32> to vector<8x16x64xf32>
    %c0_11 = arith.constant 0 : index
    %c0_12 = arith.constant 0 : index
    %c0_13 = arith.constant 0 : index
    %c0_14 = arith.constant 0 : index
    %17 = vector.load %arg2[%c0_11, %c0_12, %c0_13, %c0_14] : memref<1x1x16x128xf32, #tpu.memory_space<vmem>>, vector<1x1x16x128xf32>
    %18 = vector.shape_cast %17 : vector<1x1x16x128xf32> to vector<1x16x128xf32>
    %c0_15 = arith.constant 0 : index
    %c0_16 = arith.constant 0 : index
    %c0_17 = arith.constant 0 : index
    %c0_18 = arith.constant 0 : index
    %19 = vector.load %arg4[%c0_15, %c0_16, %c0_17, %c0_18] : memref<1x1x16x128xf32, #tpu.memory_space<vmem>>, vector<1x1x16x128xf32>
    %20 = vector.shape_cast %19 : vector<1x1x16x128xf32> to vector<1x16x128xf32>
    %21 = tpu.concatenate %18, %20 in 0 : vector<1x16x128xf32>, vector<1x16x128xf32> -> vector<2x16x128xf32>
    %22 = vector.shape_cast %21 : vector<2x16x128xf32> to vector<32x128xf32>
    %c0_19 = arith.constant 0 : index
    %c0_20 = arith.constant 0 : index
    %23 = vector.load %arg5[%c0_19, %c0_20] : memref<128x64xf32, #tpu.memory_space<vmem>>, vector<128x64xf32>
    %cst_21 = arith.constant dense<0.000000e+00> : vector<32x64xf32>
    %24 = tpu.matmul %22, %23, %cst_21 {dimension_numbers = #tpu.dot_dimension_numbers<[1], [0], [0], [1], [0, 0, 1, 1], [], []>} : vector<32x128xf32>, vector<128x64xf32>, vector<32x64xf32> -> vector<32x64xf32>
    %c0_22 = arith.constant 0 : index
    %c0_23 = arith.constant 0 : index
    %25 = vector.load %arg6[%c0_22, %c0_23] : memref<1x64xf32, #tpu.memory_space<vmem>>, vector<1x64xf32>
    %26 = vector.broadcast %25 : vector<1x64xf32> to vector<32x64xf32>
    %27 = arith.mulf %24, %26 : vector<32x64xf32>
    %c0_24 = arith.constant 0 : index
    %c0_25 = arith.constant 0 : index
    %28 = vector.load %arg7[%c0_24, %c0_25] : memref<1x64xf32, #tpu.memory_space<vmem>>, vector<1x64xf32>
    %29 = vector.broadcast %28 : vector<1x64xf32> to vector<32x64xf32>
    %30 = arith.addf %27, %29 : vector<32x64xf32>
    %cst_26 = arith.constant 0.000000e+00 : f32
    %31 = vector.broadcast %cst_26 : f32 to vector<32x64xf32>
    %32 = arith.cmpf ogt, %30, %31 : vector<32x64xf32>
    %cst_27 = arith.constant 1.000000e-01 : f32
    %33 = vector.broadcast %cst_27 : f32 to vector<32x64xf32>
    %34 = arith.mulf %33, %30 : vector<32x64xf32>
    %35 = arith.select %32, %30, %34 : vector<32x64xi1>, vector<32x64xf32>
    %36 = vector.shape_cast %35 : vector<32x64xf32> to vector<2x16x64xf32>
    %c0_i32 = arith.constant 0 : i32
    %37 = arith.cmpi eq, %arg1, %c0_i32 : i32
    %38 = vector.extract_strided_slice %36 {offsets = [0, 0, 0], sizes = [1, 16, 64], strides = [1, 1, 1]} : vector<2x16x64xf32> to vector<1x16x64xf32>
    %cst_28 = arith.constant 0.000000e+00 : f32
    %39 = vector.broadcast %cst_28 : f32 to vector<1x16x64xf32>
    %40 = arith.select %37, %39, %38 : vector<1x16x64xf32>
    %c1_i32 = arith.constant 1 : i32
    %41 = arith.cmpi eq, %arg1, %c1_i32 : i32
    %42 = vector.extract_strided_slice %36 {offsets = [1, 0, 0], sizes = [1, 16, 64], strides = [1, 1, 1]} : vector<2x16x64xf32> to vector<1x16x64xf32>
    %cst_29 = arith.constant 0.000000e+00 : f32
    %43 = vector.broadcast %cst_29 : f32 to vector<1x16x64xf32>
    %44 = arith.select %41, %43, %42 : vector<1x16x64xf32>
    %cst_30 = arith.constant 0.000000e+00 : f32
    %45 = vector.broadcast %cst_30 : f32 to vector<1x1x64xf32>
    %c0_31 = arith.constant 0 : index
    %c0_32 = arith.constant 0 : index
    %c64 = arith.constant 64 : index
    %46 = vector.load %arg12[%c0_31, %c0_32, %c64] : memref<10x16x192xf32, #tpu.memory_space<vmem>>, vector<1x16x64xf32>
    tpu.vector_store %arg12[%c0_31, %c0_32, %c64], %40 {strides = array<i32>} : memref<10x16x192xf32, #tpu.memory_space<vmem>>, vector<1x16x64xf32>,
    %47 = vector.extract_strided_slice %40 {offsets = [0, 0, 0], sizes = [1, 15, 64], strides = [1, 1, 1]} : vector<1x16x64xf32> to vector<1x15x64xf32>
    %48 = tpu.concatenate %45, %47 in 1 : vector<1x1x64xf32>, vector<1x15x64xf32> -> vector<1x16x64xf32>
    %c0_33 = arith.constant 0 : index
    %c0_34 = arith.constant 0 : index
    %c0_35 = arith.constant 0 : index
    %49 = vector.load %arg12[%c0_33, %c0_34, %c0_35] : memref<10x16x192xf32, #tpu.memory_space<vmem>>, vector<1x16x64xf32>
    tpu.vector_store %arg12[%c0_33, %c0_34, %c0_35], %48 {strides = array<i32>} : memref<10x16x192xf32, #tpu.memory_space<vmem>>, vector<1x16x64xf32>,
    %50 = vector.extract_strided_slice %40 {offsets = [0, 1, 0], sizes = [1, 15, 64], strides = [1, 1, 1]} : vector<1x16x64xf32> to vector<1x15x64xf32>
    %51 = tpu.concatenate %50, %45 in 1 : vector<1x15x64xf32>, vector<1x1x64xf32> -> vector<1x16x64xf32>
    %c0_36 = arith.constant 0 : index
    %c0_37 = arith.constant 0 : index
    %c128 = arith.constant 128 : index
    %52 = vector.load %arg12[%c0_36, %c0_37, %c128] : memref<10x16x192xf32, #tpu.memory_space<vmem>>, vector<1x16x64xf32>
    tpu.vector_store %arg12[%c0_36, %c0_37, %c128], %51 {strides = array<i32>} : memref<10x16x192xf32, #tpu.memory_space<vmem>>, vector<1x16x64xf32>,
    %cst_38 = arith.constant 0.000000e+00 : f32
    %53 = vector.broadcast %cst_38 : f32 to vector<8x1x64xf32>
    %c1 = arith.constant 1 : index
    %c0_39 = arith.constant 0 : index
    %c64_40 = arith.constant 64 : index
    %54 = vector.load %arg12[%c1, %c0_39, %c64_40] : memref<10x16x192xf32, #tpu.memory_space<vmem>>, vector<8x16x64xf32>
    tpu.vector_store %arg12[%c1, %c0_39, %c64_40], %16 {strides = array<i32>} : memref<10x16x192xf32, #tpu.memory_space<vmem>>, vector<8x16x64xf32>,
    %55 = vector.extract_strided_slice %16 {offsets = [0, 0, 0], sizes = [8, 15, 64], strides = [1, 1, 1]} : vector<8x16x64xf32> to vector<8x15x64xf32>
    %56 = tpu.concatenate %53, %55 in 1 : vector<8x1x64xf32>, vector<8x15x64xf32> -> vector<8x16x64xf32>
    %c1_41 = arith.constant 1 : index
    %c0_42 = arith.constant 0 : index
    %c0_43 = arith.constant 0 : index
    %57 = vector.load %arg12[%c1_41, %c0_42, %c0_43] : memref<10x16x192xf32, #tpu.memory_space<vmem>>, vector<8x16x64xf32>
    tpu.vector_store %arg12[%c1_41, %c0_42, %c0_43], %56 {strides = array<i32>} : memref<10x16x192xf32, #tpu.memory_space<vmem>>, vector<8x16x64xf32>,
    %58 = vector.extract_strided_slice %16 {offsets = [0, 1, 0], sizes = [8, 15, 64], strides = [1, 1, 1]} : vector<8x16x64xf32> to vector<8x15x64xf32>
    %59 = tpu.concatenate %58, %53 in 1 : vector<8x15x64xf32>, vector<8x1x64xf32> -> vector<8x16x64xf32>
    %c1_44 = arith.constant 1 : index
    %c0_45 = arith.constant 0 : index
    %c128_46 = arith.constant 128 : index
    %60 = vector.load %arg12[%c1_44, %c0_45, %c128_46] : memref<10x16x192xf32, #tpu.memory_space<vmem>>, vector<8x16x64xf32>
    tpu.vector_store %arg12[%c1_44, %c0_45, %c128_46], %59 {strides = array<i32>} : memref<10x16x192xf32, #tpu.memory_space<vmem>>, vector<8x16x64xf32>,
    %cst_47 = arith.constant 0.000000e+00 : f32
    %61 = vector.broadcast %cst_47 : f32 to vector<1x1x64xf32>
    %c9 = arith.constant 9 : index
    %c0_48 = arith.constant 0 : index
    %c64_49 = arith.constant 64 : index
    %62 = vector.load %arg12[%c9, %c0_48, %c64_49] : memref<10x16x192xf32, #tpu.memory_space<vmem>>, vector<1x16x64xf32>
    tpu.vector_store %arg12[%c9, %c0_48, %c64_49], %44 {strides = array<i32>} : memref<10x16x192xf32, #tpu.memory_space<vmem>>, vector<1x16x64xf32>,
    %63 = vector.extract_strided_slice %44 {offsets = [0, 0, 0], sizes = [1, 15, 64], strides = [1, 1, 1]} : vector<1x16x64xf32> to vector<1x15x64xf32>
    %64 = tpu.concatenate %61, %63 in 1 : vector<1x1x64xf32>, vector<1x15x64xf32> -> vector<1x16x64xf32>
    %c9_50 = arith.constant 9 : index
    %c0_51 = arith.constant 0 : index
    %c0_52 = arith.constant 0 : index
    %65 = vector.load %arg12[%c9_50, %c0_51, %c0_52] : memref<10x16x192xf32, #tpu.memory_space<vmem>>, vector<1x16x64xf32>
    tpu.vector_store %arg12[%c9_50, %c0_51, %c0_52], %64 {strides = array<i32>} : memref<10x16x192xf32, #tpu.memory_space<vmem>>, vector<1x16x64xf32>,
    %66 = vector.extract_strided_slice %44 {offsets = [0, 1, 0], sizes = [1, 15, 64], strides = [1, 1, 1]} : vector<1x16x64xf32> to vector<1x15x64xf32>
    %67 = tpu.concatenate %66, %61 in 1 : vector<1x15x64xf32>, vector<1x1x64xf32> -> vector<1x16x64xf32>
    %c9_53 = arith.constant 9 : index
    %c0_54 = arith.constant 0 : index
    %c128_55 = arith.constant 128 : index
    %68 = vector.load %arg12[%c9_53, %c0_54, %c128_55] : memref<10x16x192xf32, #tpu.memory_space<vmem>>, vector<1x16x64xf32>
    tpu.vector_store %arg12[%c9_53, %c0_54, %c128_55], %67 {strides = array<i32>} : memref<10x16x192xf32, #tpu.memory_space<vmem>>, vector<1x16x64xf32>,
    %c0_56 = arith.constant 0 : index
    %c0_57 = arith.constant 0 : index
    %c0_58 = arith.constant 0 : index
    %69 = vector.load %arg12[%c0_56, %c0_57, %c0_58] : memref<10x16x192xf32, #tpu.memory_space<vmem>>, vector<8x16x192xf32>
    %70 = vector.shape_cast %69 : vector<8x16x192xf32> to vector<128x192xf32>
    %c0_59 = arith.constant 0 : index
    %c0_60 = arith.constant 0 : index
    %c0_61 = arith.constant 0 : index
    %71 = vector.load %arg8[%c0_59, %c0_60, %c0_61] : memref<3x192x128xf32, #tpu.memory_space<vmem>>, vector<1x192x128xf32>
    %72 = vector.shape_cast %71 : vector<1x192x128xf32> to vector<192x128xf32>
    %cst_62 = arith.constant dense<0.000000e+00> : vector<128x128xf32>
    %73 = tpu.matmul %70, %72, %cst_62 {dimension_numbers = #tpu.dot_dimension_numbers<[1], [0], [0], [1], [0, 0, 1, 1], [], []>} : vector<128x192xf32>, vector<192x128xf32>, vector<128x128xf32> -> vector<128x128xf32>
    %c1_63 = arith.constant 1 : index
    %c0_64 = arith.constant 0 : index
    %c0_65 = arith.constant 0 : index
    %74 = vector.load %arg12[%c1_63, %c0_64, %c0_65] : memref<10x16x192xf32, #tpu.memory_space<vmem>>, vector<8x16x192xf32>
    %75 = vector.shape_cast %74 : vector<8x16x192xf32> to vector<128x192xf32>
    %c1_66 = arith.constant 1 : index
    %c0_67 = arith.constant 0 : index
    %c0_68 = arith.constant 0 : index
    %76 = vector.load %arg8[%c1_66, %c0_67, %c0_68] : memref<3x192x128xf32, #tpu.memory_space<vmem>>, vector<1x192x128xf32>
    %77 = vector.shape_cast %76 : vector<1x192x128xf32> to vector<192x128xf32>
    %cst_69 = arith.constant dense<0.000000e+00> : vector<128x128xf32>
    %78 = tpu.matmul %75, %77, %cst_69 {dimension_numbers = #tpu.dot_dimension_numbers<[1], [0], [0], [1], [0, 0, 1, 1], [], []>} : vector<128x192xf32>, vector<192x128xf32>, vector<128x128xf32> -> vector<128x128xf32>
    %79 = arith.addf %73, %78 : vector<128x128xf32>
    %c2 = arith.constant 2 : index
    %c0_70 = arith.constant 0 : index
    %c0_71 = arith.constant 0 : index
    %80 = vector.load %arg12[%c2, %c0_70, %c0_71] : memref<10x16x192xf32, #tpu.memory_space<vmem>>, vector<8x16x192xf32>
    %81 = vector.shape_cast %80 : vector<8x16x192xf32> to vector<128x192xf32>
    %c2_72 = arith.constant 2 : index
    %c0_73 = arith.constant 0 : index
    %c0_74 = arith.constant 0 : index
    %82 = vector.load %arg8[%c2_72, %c0_73, %c0_74] : memref<3x192x128xf32, #tpu.memory_space<vmem>>, vector<1x192x128xf32>
    %83 = vector.shape_cast %82 : vector<1x192x128xf32> to vector<192x128xf32>
    %cst_75 = arith.constant dense<0.000000e+00> : vector<128x128xf32>
    %84 = tpu.matmul %81, %83, %cst_75 {dimension_numbers = #tpu.dot_dimension_numbers<[1], [0], [0], [1], [0, 0, 1, 1], [], []>} : vector<128x192xf32>, vector<192x128xf32>, vector<128x128xf32> -> vector<128x128xf32>
    %85 = arith.addf %79, %84 : vector<128x128xf32>
    %c0_76 = arith.constant 0 : index
    %c0_77 = arith.constant 0 : index
    %86 = vector.load %arg9[%c0_76, %c0_77] : memref<1x128xf32, #tpu.memory_space<vmem>>, vector<1x128xf32>
    %87 = vector.broadcast %86 : vector<1x128xf32> to vector<128x128xf32>
    %88 = arith.mulf %85, %87 : vector<128x128xf32>
    %c0_78 = arith.constant 0 : index
    %c0_79 = arith.constant 0 : index
    %89 = vector.load %arg10[%c0_78, %c0_79] : memref<1x128xf32, #tpu.memory_space<vmem>>, vector<1x128xf32>
    %90 = vector.broadcast %89 : vector<1x128xf32> to vector<128x128xf32>
    %91 = arith.addf %88, %90 : vector<128x128xf32>
    %cst_80 = arith.constant 0.000000e+00 : f32
    %92 = vector.broadcast %cst_80 : f32 to vector<128x128xf32>
    %93 = arith.cmpf ogt, %91, %92 : vector<128x128xf32>
    %cst_81 = arith.constant 1.000000e-01 : f32
    %94 = vector.broadcast %cst_81 : f32 to vector<128x128xf32>
    %95 = arith.mulf %94, %91 : vector<128x128xf32>
    %96 = arith.select %93, %91, %95 : vector<128x128xi1>, vector<128x128xf32>
    %97 = vector.shape_cast %96 : vector<128x128xf32> to vector<8x16x128xf32>
    %98 = arith.addf %97, %1 : vector<8x16x128xf32>
    %c0_82 = arith.constant 0 : index
    %c0_83 = arith.constant 0 : index
    %c0_84 = arith.constant 0 : index
    %c0_85 = arith.constant 0 : index
    %99 = vector.load %arg11[%c0_82, %c0_83, %c0_84, %c0_85] : memref<1x8x16x128xf32, #tpu.memory_space<vmem>>, vector<1x8x16x128xf32>
    %100 = vector.shape_cast %99 : vector<1x8x16x128xf32> to vector<8x16x128xf32>
    %101 = vector.shape_cast %98 : vector<8x16x128xf32> to vector<1x8x16x128xf32>
    tpu.vector_store %arg11[%c0_82, %c0_83, %c0_84, %c0_85], %101 {strides = array<i32>} : memref<1x8x16x128xf32, #tpu.memory_space<vmem>>, vector<1x8x16x128xf32>,
    return
  }
  func.func @transform_0(%arg0: i32, %arg1: i32) -> (i32, i32, i32, i32) {
    %c8_i32 = arith.constant 8 : i32
    %0 = arith.muli %arg1, %c8_i32 : i32
    %c1_i32 = arith.constant 1 : i32
    %1 = arith.subi %0, %c1_i32 : i32
    %c0_i32 = arith.constant 0 : i32
    %2 = arith.maxsi %1, %c0_i32 : i32
    %c0_i32_0 = arith.constant 0 : i32
    %c0_i32_1 = arith.constant 0 : i32
    %c0_i32_2 = arith.constant 0 : i32
    return %arg0, %2, %c0_i32_0, %c0_i32_1 : i32, i32, i32, i32
  }
  func.func @transform_1(%arg0: i32, %arg1: i32) -> (i32, i32, i32, i32) {
    %c0_i32 = arith.constant 0 : i32
    %c0_i32_0 = arith.constant 0 : i32
    %c0_i32_1 = arith.constant 0 : i32
    return %arg0, %arg1, %c0_i32, %c0_i32_0 : i32, i32, i32, i32
  }
  func.func @transform_2(%arg0: i32, %arg1: i32) -> (i32, i32, i32, i32) {
    %c8_i32 = arith.constant 8 : i32
    %0 = arith.muli %arg1, %c8_i32 : i32
    %c8_i32_0 = arith.constant 8 : i32
    %1 = arith.addi %0, %c8_i32_0 : i32
    %c15_i32 = arith.constant 15 : i32
    %2 = arith.minsi %1, %c15_i32 : i32
    %c0_i32 = arith.constant 0 : i32
    %c0_i32_1 = arith.constant 0 : i32
    %c0_i32_2 = arith.constant 0 : i32
    return %arg0, %2, %c0_i32, %c0_i32_1 : i32, i32, i32, i32
  }
  func.func @transform_3(%arg0: i32, %arg1: i32) -> (i32, i32) {
    %c0_i32 = arith.constant 0 : i32
    %c0_i32_0 = arith.constant 0 : i32
    %c0_i32_1 = arith.constant 0 : i32
    return %c0_i32, %c0_i32_0 : i32, i32
  }
  func.func @transform_4(%arg0: i32, %arg1: i32) -> (i32, i32) {
    %c0_i32 = arith.constant 0 : i32
    %c0_i32_0 = arith.constant 0 : i32
    %c0_i32_1 = arith.constant 0 : i32
    return %c0_i32, %c0_i32_0 : i32, i32
  }
  func.func @transform_5(%arg0: i32, %arg1: i32) -> (i32, i32) {
    %c0_i32 = arith.constant 0 : i32
    %c0_i32_0 = arith.constant 0 : i32
    %c0_i32_1 = arith.constant 0 : i32
    return %c0_i32, %c0_i32_0 : i32, i32
  }
  func.func @transform_6(%arg0: i32, %arg1: i32) -> (i32, i32, i32) {
    %c0_i32 = arith.constant 0 : i32
    %c0_i32_0 = arith.constant 0 : i32
    %c0_i32_1 = arith.constant 0 : i32
    %c0_i32_2 = arith.constant 0 : i32
    return %c0_i32, %c0_i32_0, %c0_i32_1 : i32, i32, i32
  }
  func.func @transform_7(%arg0: i32, %arg1: i32) -> (i32, i32) {
    %c0_i32 = arith.constant 0 : i32
    %c0_i32_0 = arith.constant 0 : i32
    %c0_i32_1 = arith.constant 0 : i32
    return %c0_i32, %c0_i32_0 : i32, i32
  }
  func.func @transform_8(%arg0: i32, %arg1: i32) -> (i32, i32) {
    %c0_i32 = arith.constant 0 : i32
    %c0_i32_0 = arith.constant 0 : i32
    %c0_i32_1 = arith.constant 0 : i32
    return %c0_i32, %c0_i32_0 : i32, i32
  }
  func.func @transform_9(%arg0: i32, %arg1: i32) -> (i32, i32, i32, i32) {
    %c0_i32 = arith.constant 0 : i32
    %c0_i32_0 = arith.constant 0 : i32
    %c0_i32_1 = arith.constant 0 : i32
    return %arg0, %arg1, %c0_i32, %c0_i32_0 : i32, i32, i32, i32
  }
}

</mosaic_0001>

<bundles_post_ra>
// kernel: residual_block_forward.2
= control target key start
LH: loop header
LB: loop body
LE: loop exit
PB: predicated region body
PF: predicated region fallthrough
CT: control target
= control target key end

     0   :  { %s4769_s0 = inlined_call_operand.hbm [shape: f32[2,16,16,128], index: 0, kind: input, shape index: {}, may-alias: {0,1,2}]   ;;  %s4770_s1 = inlined_call_operand.hbm [shape: f32[2,16,16,128], index: 1, kind: input, shape index: {}, may-alias: {0,1,2}]   ;;  %s4771_s2 = inlined_call_operand.hbm [shape: f32[2,16,16,128], index: 2, kind: input, shape index: {}, may-alias: {0,1,2}]   ;;  %s4772_s3 = inlined_call_operand.hbm [shape: f32[128,64], index: 3, kind: input, shape index: {}]   ;;  %s4773_s4 = inlined_call_operand.hbm [shape: f32[1,64], index: 4, kind: input, shape index: {}]   ;;  %s4774_s5 = inlined_call_operand.hbm [shape: f32[1,64], index: 5, kind: input, shape index: {}]   ;;  %s4775_s6 = inlined_call_operand.hbm [shape: f32[3,192,128], index: 6, kind: input, shape index: {}]   ;;  %s4776_s7 = inlined_call_operand.hbm [shape: f32[1,128], index: 7, kind: input, shape index: {}]   ;;  %s4777_s8 = inlined_call_operand.hbm [shape: f32[1,128], index: 8, kind: input, shape index: {}]   ;;  %s4778_s9 = inlined_call_operand.hbm [shape: f32[2,16,16,128], index: 9, kind: output, shape index: {}]  }
   0x1   :  { %4808 = sst [smem:[#allocation42_spill]] %s4769_s0 }
   0x2   :  { %4809 = sst [smem:[#allocation43_spill]] %s4770_s1 }
   0x3   :  { %4810 = sst [smem:[#allocation44_spill]] %s4771_s2 }
   0x4   :  { %4811 = sst [smem:[#allocation45_spill]] %s4772_s3 }
   0x5   :  { %4812 = sst [smem:[#allocation46_spill]] %s4773_s4 }
   0x6   :  { %4813 = sst [smem:[#allocation47_spill]] %s4774_s5 }
   0x7   :  { %4814 = sst [smem:[#allocation48_spill]] %s4775_s6 }
   0x8   :  { %4815 = sst [smem:[#allocation49_spill]] %s4776_s7 }
   0x9   :  { %4816 = sst [smem:[#allocation50_spill]] %s4777_s8 }
   0xa   :  { %4817 = sst [smem:[#allocation51_spill]] %s4778_s9 }
   0xb   :  { %14 = vsyncpa [#allocation4], 0 }
   0xc   :  { %16 = vsyncpa [#allocation4 + $0x1], 0 }
   0xd   :  { %17 = vsyncpa [#allocation7], 0 }
   0xe   :  { %19 = vsyncpa [#allocation7 + $0x1], 0 }
   0xf   :  { %20 = vsyncpa [#allocation10], 0 }
  0x10   :  { %21 = vsyncpa [#allocation13], 0 }
  0x11   :  { %22 = vsyncpa [#allocation16], 0 }
  0x12   :  { %23 = vsyncpa [#allocation5], 0 }
  0x13   :  { %25 = vsyncpa [#allocation5 + $0x1], 0  ;;  %s3512_s30 = smov 0   ;;  %s3514_s10 = smov 0  }
  0x14   :  { %s3516_s11 = smov 0   ;;  %s3518_s12 = smov 0  }
  0x15   :  { %s3520_s13 = smov 0   ;;  %s3522_s14 = smov 0  }
  0x16   :  { %s3524_s15 = smov 0   ;;  %s3526_s16 = smov 0  }
  0x17   :  { %s3528_s17 = smov 0   ;;  %s3530_s18 = smov 0  }
  0x18   :  { %s3532_s19 = smov 0   ;;  %s3534_s20 = smov 0  }
  0x19   :  { %s3536_s21 = smov 0   ;;  %s3538_s22 = smov 0  }
  0x1a LB: > { %4818 = sst [smem:[#allocation26_spill]] %s3392_s30  ;;  %s3583_s23 = sadd.s32 4294967295, %s3444_s22   ;;  %s3444_s22 = sphi %s3538_s22, %s31_s22   ;;  %s3440_s21 = sphi %s3536_s21, %s4909_s21   ;;  %s3436_s20 = sphi %s3534_s20, %s4917_s20   ;;  %s3432_s19 = sphi %s3532_s19, %s4907_s19   ;;  %s3428_s18 = sphi %s3530_s18, %s4916_s18   ;;  %s3424_s17 = sphi %s3528_s17, %s4915_s17   ;;  %s3420_s16 = sphi %s3526_s16, %s4914_s16   ;;  %s3416_s15 = sphi %s3524_s15, %s4904_s15   ;;  %s3412_s14 = sphi %s3522_s14, %s4913_s14   ;;  %s3408_s13 = sphi %s3520_s13, %s4912_s13   ;;  %s3404_s12 = sphi %s3518_s12, %s4911_s12   ;;  %s3400_s11 = sphi %s3516_s11, %s4910_s11   ;;  %s3396_s10 = sphi %s3514_s10, %s4903_s10   ;;  %s3392_s30 = sphi %s3512_s30, %s4902_s30  }
  0x1b   : > { %4819 = sst [smem:[#allocation27_spill]] %s3396_s10  ;;  %p2339_p0 = scmp.ge.s32.totalorder %s3444_s22, 1 }
  0x1c   : > { %4820 = sst [smem:[#allocation28_spill]] %s3400_s11  ;;  %p4787_p1 = scmp.eq.s32.totalorder %s3583_s23, 0 }
  0x1d   : > { %4821 = sst [smem:[#allocation29_spill]] %s3404_s12  ;;  %p302_p2 = scmp.lt.s32.totalorder %s3444_s22, 5 }
  0x1e   : > { %4822 = sst [smem:[#allocation30_spill]] %s3416_s15  ;;  %s3446_s25 = smov [#allocation9]  }
  0x1f   : > { %4823 = sst [smem:[#allocation31_spill]] %s3420_s16  ;;  %p3588_p3 = pnand %p2339_p0, %p302_p2 }
  0x20   : > { %4824 = sst [smem:[#allocation32_spill]] %s3428_s18  ;;  %s314_s26 = sshll.u32 %s3446_s25, 4  ;;  %s3592_s26 = int_to_ptr.vmem [resolvable:$true] %s314_s26 }
  0x21   : > { %4825 = sst [smem:[#allocation33_spill]] %s3432_s19  ;;  %p2833_p4 = pneg %p3588_p3 }
  0x22   : > { %4826 = sst [smem:[#allocation34_spill]] %s3436_s20  ;;  %s3447_s28 = smov [#allocation12]  }
  0x23   : > { %4827 = sst [smem:[#allocation35_spill]] %s3440_s21  ;;  %p3598_p5 = pnand %p2833_p4, %p4787_p1 }
  0x24   : > { %s4828_s24 = scalar_select %p3588_p3, 1, 0 }
  0x25   : > { %s4830_s27 = scalar_select %p3598_p5, 1, 0 }
  0x26   : > { %4829 = sst [smem:[#allocation36_spill]] %s4828_s24  ;;  %s339_s29 = sshll.u32 %s3447_s28, 4  ;;  %s3602_s29 = int_to_ptr.vmem [resolvable:$true] %s339_s29 }
  0x27   : > { %s3448_s9 = smov [#allocation15]   ;;  %s4831_s3 = sld [smem:[#allocation45_spill]] }
  0x28   : > { %s3604_s19 = sshll.u32 %s3448_s9, 4  ;;  %p3614_p7 = pneg %p3598_p5  ;;  %s364_s19 = int_to_ptr.vmem [resolvable:$true] %s3604_s19 }
  0x2d   : > { %s3020_s25 = scalar_lea.hbm %s4831_s3, 2048 }
  0x2e   : > { %p3021_p6 = scmp.ne.s32.totalorder %s4831_s3, %s3020_s25  ;;  %p3027_p10 = scmp.lt.u32.totalorder %s3020_s25, %s4831_s3 }
  0x30   : > { %p3023_p8 = pnand %p3614_p7, %p3021_p6 }
  0x32   : > { %p3024_p9 = pneg %p3023_p8 }
  0x34   : > { %p3029_p11 = pnand %p3027_p10, %p3024_p9 }
  0x36   : > { %3032 = shalt.err (!%p3029_p11)
}
  0x37   : > { %s3033_s2 = scalar_lea.vmem %s3592_s26, 2048  ;;  %p3041_p2 = scmp.lt.s32.totalorder %s3592_s26, %s3592_s26 }
  0x38   : > { %p3034_p12 = scmp.ne.s32.totalorder %s3592_s26, %s3033_s2  ;;  %p3042_p4 = scmp.lt.s32.totalorder %s3033_s2, %s3033_s2 }
  0x3a   : > { %p3036_p13 = pnand %p3034_p12, %p3614_p7  ;;  %p3043_p6 = por %p3042_p4, %p3041_p2 }
  0x3c   : > { %p3037_p0 = pneg %p3036_p13 }
  0x3e   : > { %p3044_p8 = pnand %p3043_p6, %p3037_p0 }
  0x40   : > { %3047 = shalt.err (!%p3044_p8)
}
  0x41   : > { %s4789_s30 = smov 128   ;;  %s4791_s18 = smov 8  }
  0x42   : > { %2836 = dma.hbm_to_vmem [thread:$0]  (!%p3598_p5), %s4831_s3, 2048, %s3592_s26, [#allocation10], %s4789_s30, %s4789_s30, %s4791_s18  }
  0x43   : > { %s4833_s5 = sld [smem:[#allocation47_spill]] }
  0x49   : > { %s3048_s2 = scalar_lea.hbm %s4833_s5, 16 }
  0x4a   : > { %p3049_p9 = scmp.ne.s32.totalorder %s4833_s5, %s3048_s2  ;;  %p3055_p12 = scmp.lt.u32.totalorder %s3048_s2, %s4833_s5 }
  0x4c   : > { %p3051_p10 = pnand %p3049_p9, %p3614_p7 }
  0x4e   : > { %p3052_p11 = pneg %p3051_p10 }
  0x50   : > { %p3057_p13 = pnand %p3055_p12, %p3052_p11 }
  0x52   : > { %3060 = shalt.err (!%p3057_p13)
}
  0x53   : > { %s3061_s26 = scalar_lea.vmem %s3602_s29, 16  ;;  %s3068_s0 = scalar_lea.vmem %s3602_s29, 32 }
  0x54   : > { %p3062_p0 = scmp.ne.s32.totalorder %s3602_s29, %s3061_s26  ;;  %p3069_p6 = scmp.lt.s32.totalorder %s3602_s29, %s3602_s29 }
  0x55   : > { %p3070_p8 = scmp.lt.s32.totalorder %s3068_s0, %s3061_s26 }
  0x56   : > { %p3064_p2 = pnand %p3062_p0, %p3614_p7 }
  0x57   : > { %p3071_p9 = por %p3070_p8, %p3069_p6 }
  0x58   : > { %p3065_p4 = pneg %p3064_p2 }
  0x5a   : > { %p3072_p10 = pnand %p3071_p9, %p3065_p4 }
  0x5c   : > { %3075 = shalt.err (!%p3072_p10)
}
  0x5d   : > { %2842 = dma.hbm_to_vmem [thread:$0]  (!%p3598_p5), %s4833_s5, 16, %s3602_s29, [#allocation13]  }
  0x5e   : > { %s4834_s7 = sld [smem:[#allocation49_spill]] }
  0x64   : > { %s3076_s25 = scalar_lea.hbm %s4834_s7, 16 }
  0x65   : > { %p3077_p11 = scmp.ne.s32.totalorder %s4834_s7, %s3076_s25  ;;  %p3083_p0 = scmp.lt.u32.totalorder %s3076_s25, %s4834_s7 }
  0x67   : > { %p3079_p12 = pnand %p3077_p11, %p3614_p7 }
  0x69   : > { %p3080_p13 = pneg %p3079_p12 }
  0x6b   : > { %p3085_p2 = pnand %p3083_p0, %p3080_p13 }
  0x6d   : > { %3088 = shalt.err (!%p3085_p2)
}
  0x6e   : > { %s3089_s0 = scalar_lea.vmem %s364_s19, 16  ;;  %s3096_s29 = scalar_lea.vmem %s364_s19, 32 }
  0x6f   : > { %p3090_p4 = scmp.ne.s32.totalorder %s364_s19, %s3089_s0  ;;  %p3097_p9 = scmp.lt.s32.totalorder %s364_s19, %s364_s19 }
  0x70   : > { %p3098_p10 = scmp.lt.s32.totalorder %s3096_s29, %s3089_s0 }
  0x71   : > { %p3092_p6 = pnand %p3090_p4, %p3614_p7 }
  0x72   : > { %p3099_p1 = por %p3098_p10, %p3097_p9 }
  0x73   : > { %p3093_p8 = pneg %p3092_p6 }
  0x75   : > { %p3100_p3 = pnand %p3099_p1, %p3093_p8 }
  0x77   : > { %3103 = shalt.err (!%p3100_p3)
}
  0x78   : > { %2848 = dma.hbm_to_vmem [thread:$0]  (!%p3598_p5), %s4834_s7, 16, %s364_s19, [#allocation16]  }
  0x79   : > { %s2332_s16 = sadd.s32 4294967294, %s3444_s22   ;;  %s40_s24 = sadd.s32 1, %s3436_s20 }
  0x7a   : > { %s43_s25 = sadd.s32 1, %s3440_s21  ;;  %p41_p1 = scmp.ge.s32.totalorder %s40_s24, 2 }
  0x7b   : > { %p4796_p3 = scmp.eq.s32.totalorder %s3444_s22, 0  ;;  %p95_p11 = scmp.ne.s32.totalorder %s3412_s14, %s3408_s13 }
  0x7c   : > { %s4919_s24 = smov (%p41_p1, %s40_s24), 0  ;;  %s4921_s25 = smov (!%p41_p1, %s43_s25), %s3440_s21 }
  0x7d   : > { %4835 = sst [smem:[#allocation37_spill]] %s4919_s24  ;;  %p3697_p12 = por %p95_p11, %p4796_p3 }
  0x7e   : > { %p101_p13 = scmp.ne.s32.totalorder %s3408_s13, %s3404_s12  ;;  %p289_p0 = scmp.eq.s32.totalorder %s3583_s23, 3 }
  0x7f   : > { %p295_p2 = scmp.eq.s32.totalorder %s2332_s16, 3  ;;  %p4795_p4 = scmp.lt.s32.totalorder %s3444_s22, 4 }
  0x80   : > { %p4837_p6 = scmp.eq.s32.totalorder %s3583_s23, 0  ;;  %p3711_p9 = por %p289_p0, %p95_p11 }
  0x81   : > { %p3715_p10 = por %p295_p2, %p101_p13  ;;  %s3720_s29 = sshll.u32 %s3440_s21, 5 }
  0x82   : > { %p3707_p8 = por %p101_p13, %p4837_p6  ;;  %s412_s11 = sand.u32 1, %s3444_s22  }
  0x83   : > { %s4839_s26 = scalar_select %p3711_p9, 1, 0 }
  0x84   : > { %s4838_s2 = scalar_select %p3707_p8, 1, 0 }
  0x85   : > { %4840 = sst [smem:[#allocation38_spill]] %s4839_s26  ;;  %s414_s15 = sand.u32 1, %s3412_s14  }
  0x86   : > { %s4841_s0 = scalar_select %p3715_p10, 1, 0 }
  0x87   : > { %s2353_s16 = sshll.u32 %s414_s15, 7  ;;  %s2433_s28 = sshll.u32 %s3436_s20, 4 }
  0x88   : > { %4842 = sst [smem:[#allocation39_spill]] %s4841_s0  ;;  %s423_s9 = sadd.s32 %s2433_s28, %s3720_s29 }
  0x89   : > { %s416_s30 = scalar_lea.vmem [#allocation6], %s2353_s16  ;;  %s2357_s3 = sshll.u32 %s423_s9, 7 }
  0x8a   : > { %s426_s18 = sshll.u32 %s416_s30, 4  ;;  %s4843_s1 = sld [smem:[#allocation43_spill]]  ;;  %s3726_s18 = int_to_ptr.vmem [resolvable:$true] %s426_s18 }
  0x8b   : > { %p3737_p1 = pnand %p4795_p4, %p3697_p12  ;;  %s3451_s30 = smov [#allocation11]  }
  0x8c   : > { %s3741_s28 = sshll.u32 %s3451_s30, 4  ;;  %s3743_s9 = scalar_lea.sflag [#allocation7], %s412_s11  ;;  %s329_s28 = int_to_ptr.vmem [resolvable:$true] %s3741_s28 }
  0x8d   : > { %p3106_p13 = pneg %p3737_p1 }
  0x90   : > { %s3731_s12 = scalar_lea.hbm %s4843_s1, %s2357_s3  ;;  %s3109_s19 = scalar_lea.hbm %s4843_s1, 8192 }
  0x91   : > { %s3104_s5 = scalar_lea.hbm %s3731_s12, 2048  ;;  %p3110_p12 = scmp.lt.u32.totalorder %s3731_s12, %s4843_s1 }
  0x92   : > { %p3105_p11 = scmp.ne.s32.totalorder %s3731_s12, %s3104_s5  ;;  %p3111_p6 = scmp.lt.u32.totalorder %s3109_s19, %s3104_s5 }
  0x93   : > { %p3113_p3 = scmp.lt.u32.totalorder %s3104_s5, %s3731_s12 }
  0x94   : > { %p3107_p0 = pnand %p3106_p13, %p3105_p11  ;;  %p3112_p4 = por %p3111_p6, %p3110_p12 }
  0x96   : > { %p3108_p2 = pneg %p3107_p0  ;;  %p3114_p10 = por %p3113_p3, %p3112_p4 }
  0x98   : > { %p3115_p9 = pnand %p3114_p10, %p3108_p2 }
  0x9a   : > { %3118 = shalt.err (!%p3115_p9)
}
  0x9b   : > { %s3119_s11 = scalar_lea.vmem %s3726_s18, 2048  ;;  %s3452_s30 = smov [#allocation6]  }
  0x9c   : > { %p3120_p11 = scmp.ne.s32.totalorder %s3726_s18, %s3119_s11  ;;  %s3124_s3 = sshll.u32 %s3452_s30, 4  ;;  %s3125_s3 = int_to_ptr.vmem [resolvable:$false] %s3124_s3 }
  0x9d   : > { %s3126_s0 = scalar_lea.vmem %s3125_s3, 4096  ;;  %p3127_p5 = scmp.lt.s32.totalorder %s3726_s18, %s3125_s3 }
  0x9e   : > { %p3122_p0 = pnand %p3120_p11, %p3106_p13  ;;  %p3128_p12 = scmp.lt.s32.totalorder %s3126_s0, %s3119_s11 }
  0xa0   : > { %p3123_p8 = pneg %p3122_p0  ;;  %p3129_p6 = por %p3128_p12, %p3127_p5 }
  0xa2   : > { %p3130_p3 = pnand %p3129_p6, %p3123_p8 }
  0xa4   : > { %3133 = shalt.err (!%p3130_p3)
}
  0xa5   : > { %s4845_s5 = smov 8   ;;  %s4846_s7 = smov 128  }
  0xa6   : > { %2858 = dma.hbm_to_vmem [thread:$0]  (!%p3737_p1), %s3731_s12, 2048, %s3726_s18, %s3743_s9, %s4846_s7, %s4846_s7, %s4845_s5  }
  0xa7   : > { %s3453_s19 = smov [#allocation14]   ;;  %s4847_s4 = sld [smem:[#allocation46_spill]] }
  0xa8   : > { %s349_s16 = sshll.u32 %s3453_s19, 4  ;;  %s350_s16 = int_to_ptr.vmem [resolvable:$true] %s349_s16 }
  0xad   : > { %s3134_s11 = scalar_lea.hbm %s4847_s4, 16 }
  0xae   : > { %p3135_p5 = scmp.ne.s32.totalorder %s4847_s4, %s3134_s11  ;;  %p3141_p9 = scmp.lt.u32.totalorder %s3134_s11, %s4847_s4 }
  0xb0   : > { %p3137_p4 = pnand %p3135_p5, %p3614_p7 }
  0xb2   : > { %p3138_p8 = pneg %p3137_p4 }
  0xb4   : > { %p3143_p10 = pnand %p3141_p9, %p3138_p8 }
  0xb6   : > { %3146 = shalt.err (!%p3143_p10)
}
  0xb7   : > { %s3147_s12 = scalar_lea.vmem %s329_s28, 16  ;;  %s3154_s18 = scalar_lea.vmem %s329_s28, 32 }
  0xb8   : > { %p3148_p1 = scmp.ne.s32.totalorder %s329_s28, %s3147_s12  ;;  %p3155_p11 = scmp.lt.s32.totalorder %s329_s28, %s329_s28 }
  0xb9   : > { %p3156_p0 = scmp.lt.s32.totalorder %s3154_s18, %s3147_s12 }
  0xba   : > { %p3150_p13 = pnand %p3148_p1, %p3614_p7 }
  0xbb   : > { %p3157_p12 = por %p3156_p0, %p3155_p11 }
  0xbc   : > { %p3151_p2 = pneg %p3150_p13 }
  0xbe   : > { %p3158_p6 = pnand %p3157_p12, %p3151_p2 }
  0xc0   : > { %3161 = shalt.err (!%p3158_p6)
}
  0xc1   : > { %p4848_p3 = scmp.ne.s32.totalorder %s4830_s27, 0  ;;  %s4849_s6 = sld [smem:[#allocation48_spill]] }
  0xc3   : > { %2839 = dma.hbm_to_vmem [thread:$0]  (!%p4848_p3), %s4847_s4, 16, %s329_s28, [#allocation10]  }
  0xc7   : > { %s3162_s3 = scalar_lea.hbm %s4849_s6, 9216 }
  0xc8   : > { %p3163_p5 = scmp.ne.s32.totalorder %s4849_s6, %s3162_s3  ;;  %p3169_p9 = scmp.lt.u32.totalorder %s3162_s3, %s4849_s6 }
  0xca   : > { %p3165_p4 = pnand %p3163_p5, %p3614_p7 }
  0xcc   : > { %p3166_p8 = pneg %p3165_p4 }
  0xce   : > { %p3171_p10 = pnand %p3169_p9, %p3166_p8 }
  0xd0   : > { %3174 = shalt.err (!%p3171_p10)
}
  0xd1   : > { %s3175_s18 = scalar_lea.vmem %s350_s16, 9216  ;;  %p3183_p11 = scmp.lt.s32.totalorder %s350_s16, %s350_s16 }
  0xd2   : > { %p3176_p1 = scmp.ne.s32.totalorder %s350_s16, %s3175_s18  ;;  %p3184_p0 = scmp.lt.s32.totalorder %s3175_s18, %s3175_s18 }
  0xd4   : > { %p3178_p13 = pnand %p3176_p1, %p3614_p7  ;;  %p3185_p12 = por %p3184_p0, %p3183_p11 }
  0xd6   : > { %p3179_p2 = pneg %p3178_p13 }
  0xd8   : > { %p3186_p6 = pnand %p3185_p12, %p3179_p2 }
  0xda   : > { %3189 = shalt.err (!%p3186_p6)
}
  0xdb   : > { %2845 = dma.hbm_to_vmem [thread:$0]  (!%p4848_p3), %s4849_s6, 9216, %s350_s16, [#allocation13], %s4846_s7, %s4846_s7, %s4845_s5  }
  0xdc   : > { %s3454_s19 = smov [#allocation17]   ;;  %s4850_s8 = sld [smem:[#allocation50_spill]] }
  0xdd   : > { %s374_s26 = sshll.u32 %s3454_s19, 4  ;;  %s375_s26 = int_to_ptr.vmem [resolvable:$true] %s374_s26 }
  0xe2   : > { %s3190_s11 = scalar_lea.hbm %s4850_s8, 16 }
  0xe3   : > { %p3191_p5 = scmp.ne.s32.totalorder %s4850_s8, %s3190_s11  ;;  %p3197_p9 = scmp.lt.u32.totalorder %s3190_s11, %s4850_s8 }
  0xe5   : > { %p3193_p4 = pnand %p3191_p5, %p3614_p7 }
  0xe7   : > { %p3194_p8 = pneg %p3193_p4 }
  0xe9   : > { %p3199_p10 = pnand %p3197_p9, %p3194_p8 }
  0xeb   : > { %3202 = shalt.err (!%p3199_p10)
}
  0xec   : > { %s3203_s16 = scalar_lea.vmem %s375_s26, 16  ;;  %s3210_s28 = scalar_lea.vmem %s375_s26, 32 }
  0xed   : > { %p3204_p1 = scmp.ne.s32.totalorder %s375_s26, %s3203_s16  ;;  %p3211_p11 = scmp.lt.s32.totalorder %s375_s26, %s375_s26 }
  0xee   : > { %p3212_p0 = scmp.lt.s32.totalorder %s3210_s28, %s3203_s16 }
  0xef   : > { %p3206_p13 = pnand %p3204_p1, %p3614_p7 }
  0xf0   : > { %p3213_p12 = por %p3212_p0, %p3211_p11 }
  0xf1   : > { %p3207_p2 = pneg %p3206_p13 }
  0xf3   : > { %p3214_p6 = pnand %p3213_p12, %p3207_p2 }
  0xf5   : > { %3217 = shalt.err (!%p3214_p6)
}
  0xf6   : > { %s4851_s10 = sld [smem:[#allocation31_spill]]  ;;  %p45_p7 = scmp.ge.s32.totalorder %s4921_s25, 2 }
  0xf7   : > { %s4852_s30 = sld [smem:[#allocation30_spill]]  ;;  %s2333_s3 = sshll.u32 %s3436_s20, 3 }
  0xf8   : > { %2851 = dma.hbm_to_vmem [thread:$0]  (!%p4848_p3), %s4850_s8, 16, %s375_s26, [#allocation16]  }
  0xf9   : > { %s2334_s11 = sadd.s32 4294967295, %s2333_s3  ;;  %s2335_s27 = sshll.u32 %s4919_s24, 3 }
  0xfa   : > { %s4923_s25 = smov (%p45_p7, %s4921_s25), 0  ;;  %p49_p5 = scmp.gt.s32.totalorder %s2334_s11, 0 }
  0xfb   : > { %4853 = sst [smem:[#allocation40_spill]] %s4923_s25  ;;  %s2336_s0 = sadd.s32 4294967295, %s2335_s27 }
  0xfc   : > { %p53_p4 = scmp.gt.s32.totalorder %s2336_s0, 0  ;;  %s3840_s15 = ssub.s32 %s3440_s21, %s4923_s25 }
  0xfd   : > { %s4925_s11 = smov (!%p49_p5, %s2334_s11), 0  ;;  %s60_s26 = sadd.s32 1, %s3424_s17 }
  0xfe   : > { %s4927_s0 = smov (!%p53_p4, %s2336_s0), 0  ;;  %p67_p3 = scmp.ne.s32.totalorder %s3424_s17, %s4851_s10 }
  0xff   : > { %s56_s12 = ssub.s32 %s4925_s11, %s4927_s0  ;;  %p73_p8 = scmp.ne.s32.totalorder %s4851_s10, %s4852_s30 }
 0x100   : > { %s57_s18 = sor.u32 %s56_s12, %s3840_s15  ;;  %p4854_p9 = scmp.eq.s32.totalorder %s3444_s22, 0 }
 0x101   : > { %p58_p1 = scmp.eq.s32.totalorder %s57_s18, 0  ;;  %p4856_p13 = scmp.eq.s32.totalorder %s3583_s23, 0 }
 0x102   : > { %p3850_p10 = por %p4854_p9, %p67_p3  ;;  %s4858_s1 = ssub.s32 %s3436_s20, %s4919_s24 }
 0x103   : > { %p3856_p2 = por %p4856_p13, %p73_p8  ;;  %s85_s19 = sor.u32 %s4858_s1, %s3840_s15 }
 0x104   : > { %s3864_s4 = sadd.s32 8, %s2333_s3  ;;  %p86_p11 = scmp.eq.s32.totalorder %s85_s19, 0 }
 0x105   : > { %s3867_s10 = scalar_select %p58_p1, %s3424_s17, %s60_s26  }
 0x106   : > { %s3870_s30 = sadd.s32 8, %s2335_s27  ;;  %s385_s0 = sand.u32 1, %s3424_s17  }
 0x107   : > { %4859 = sst [smem:[#allocation41_spill]] %s3867_s10  ;;  %s4860_s12 = sadd.s32 1, %s3412_s14 }
 0x108   : > { %s3876_s18 = scalar_select %p86_p11, %s3412_s14, %s4860_s12  }
 0x109   : > { %s2347_s6 = sshll.u32 %s385_s0, 4  ;;  %s2350_s8 = sshll.u32 %s4925_s11, 1 }
 0x10a   : > { %s399_s1 = sadd.s32 %s3720_s29, %s2350_s8  ;;  %s389_s25 = scalar_lea.vmem [#allocation3], %s2347_s6 }
 0x10b   : > { %s2352_s3 = sshll.u32 %s399_s1, 7  ;;  %s402_s24 = sshll.u32 %s389_s25, 4  ;;  %s3885_s24 = int_to_ptr.vmem [resolvable:$true] %s402_s24 }
 0x10c   : > { %s4861_s26 = sld [smem:[#allocation42_spill]]  ;;  %p4862_p6 = scmp.lt.s32.totalorder %s3444_s22, 4 }
 0x10d   : > { %s3895_s6 = scalar_lea.sflag [#allocation4], %s385_s0 }
 0x10e   : > { %p3891_p7 = pnand %p4862_p6, %p3850_p10 }
 0x110   : > { %p3220_p4 = pneg %p3891_p7 }
 0x112   : > { %s3883_s10 = scalar_lea.hbm %s4861_s26, %s2352_s3  ;;  %s3223_s25 = scalar_lea.hbm %s4861_s26, 8192 }
 0x113   : > { %s3218_s8 = scalar_lea.hbm %s3883_s10, 256  ;;  %p3224_p9 = scmp.lt.u32.totalorder %s3883_s10, %s4861_s26 }
 0x114   : > { %p3219_p5 = scmp.ne.s32.totalorder %s3883_s10, %s3218_s8  ;;  %p3225_p10 = scmp.lt.u32.totalorder %s3223_s25, %s3218_s8 }
 0x115   : > { %p3227_p13 = scmp.lt.u32.totalorder %s3218_s8, %s3883_s10 }
 0x116   : > { %p3221_p3 = pnand %p3220_p4, %p3219_p5  ;;  %p3226_p1 = por %p3225_p10, %p3224_p9 }
 0x118   : > { %p3222_p8 = pneg %p3221_p3  ;;  %p3228_p11 = por %p3227_p13, %p3226_p1 }
 0x11a   : > { %p3229_p6 = pnand %p3228_p11, %p3222_p8 }
 0x11c   : > { %3232 = shalt.err (!%p3229_p6)
}
 0x11d   : > { %s3233_s19 = scalar_lea.vmem %s3885_s24, 256  ;;  %s3455_s0 = smov [#allocation3]  }
 0x11e   : > { %p3234_p5 = scmp.ne.s32.totalorder %s3885_s24, %s3233_s19  ;;  %s3238_s12 = sshll.u32 %s3455_s0, 4  ;;  %s3239_s12 = int_to_ptr.vmem [resolvable:$false] %s3238_s12 }
 0x11f   : > { %s3240_s1 = scalar_lea.vmem %s3239_s12, 512  ;;  %p3241_p0 = scmp.lt.s32.totalorder %s3885_s24, %s3239_s12 }
 0x120   : > { %p3236_p3 = pnand %p3234_p5, %p3220_p4  ;;  %p3242_p9 = scmp.lt.s32.totalorder %s3240_s1, %s3233_s19 }
 0x122   : > { %p3237_p12 = pneg %p3236_p3  ;;  %p3243_p10 = por %p3242_p9, %p3241_p0 }
 0x124   : > { %p3244_p1 = pnand %p3243_p10, %p3237_p12 }
 0x126   : > { %3247 = shalt.err (!%p3244_p1)
}
 0x127   : > { %s4864_s3 = sld [smem:[#allocation28_spill]]  ;;  %s4865_s8 = sld [smem:[#allocation27_spill]] }
 0x128   : > { %s4866_s20 = sld [smem:[#allocation26_spill]]  ;;  %p4867_p0 = scmp.lt.s32.totalorder %s3864_s4, 15 }
 0x129   : > { %2855 = dma.hbm_to_vmem [thread:$0]  (!%p3891_p7), %s3883_s10, 256, %s3885_s24, %s3895_s6, %s4846_s7, %s4846_s7, %s4845_s5  }
 0x12a   : > { %s4929_s4 = smov (!%p4867_p0, %s3864_s4), 15  ;;  %p4868_p12 = scmp.lt.s32.totalorder %s3870_s30, 15 }
 0x12b   : > { %p4869_p13 = scmp.eq.s32.totalorder %s3444_s22, 0  ;;  %p4871_p5 = scmp.eq.s32.totalorder %s3583_s23, 0 }
 0x12c   : > { %s4931_s30 = smov (!%p4868_p12, %s3870_s30), 15  ;;  %s2360_s6 = sshll.u32 %s4929_s4, 1 }
 0x12d   : > { %s124_s27 = sadd.s32 1, %s4864_s3  ;;  %p131_p4 = scmp.ne.s32.totalorder %s4864_s3, %s4865_s8 }
 0x12e   : > { %s120_s21 = ssub.s32 %s4929_s4, %s4931_s30  ;;  %p137_p8 = scmp.ne.s32.totalorder %s4865_s8, %s4866_s20 }
 0x12f   : > { %s121_s25 = sor.u32 %s120_s21, %s3840_s15  ;;  %p3940_p11 = por %p131_p4, %p4869_p13 }
 0x130   : > { %p122_p6 = scmp.eq.s32.totalorder %s121_s25, 0  ;;  %p3946_p3 = por %p137_p8, %p4871_p5 }
 0x131   : > { %s438_s10 = sand.u32 1, %s4864_s3   ;;  %s450_s16 = sadd.s32 %s2360_s6, %s3720_s29 }
 0x132   : > { %s4872_s24 = scalar_select %p3946_p3, 1, 0 }
 0x133   : > { %s4933_s3 = smov (!%p122_p6, %s4864_s3), %s124_s27  ;;  %s2358_s30 = sshll.u32 %s438_s10, 4 }
 0x134   : > { %s2362_s19 = sshll.u32 %s450_s16, 7  ;;  %s4873_s12 = sld [smem:[#allocation44_spill]] }
 0x135   : > { %s440_s20 = scalar_lea.vmem [#allocation8], %s2358_s30  ;;  %p4875_p7 = scmp.lt.s32.totalorder %s3444_s22, 4 }
 0x136   : > { %s453_s21 = sshll.u32 %s440_s20, 4  ;;  %s3960_s21 = int_to_ptr.vmem [resolvable:$true] %s453_s21 }
 0x137   : > { %p3966_p9 = pnand %p4875_p7, %p3940_p11 }
 0x139   : > { %p3250_p1 = pneg %p3966_p9 }
 0x13a   : > { %s4874_s1 = smov %s4873_s12  ;;  %s3958_s8 = scalar_lea.hbm %s4873_s12, %s2362_s19 }
 0x13b   : > { %s3248_s29 = scalar_lea.hbm %s3958_s8, 256  ;;  %s3253_s10 = scalar_lea.hbm %s4874_s1, 8192 }
 0x13c   : > { %p3249_p10 = scmp.ne.s32.totalorder %s3958_s8, %s3248_s29  ;;  %p3254_p4 = scmp.lt.u32.totalorder %s3958_s8, %s4874_s1 }
 0x13d   : > { %p3255_p8 = scmp.lt.u32.totalorder %s3253_s10, %s3248_s29  ;;  %p3257_p11 = scmp.lt.u32.totalorder %s3248_s29, %s3958_s8 }
 0x13e   : > { %p3251_p0 = pnand %p3250_p1, %p3249_p10 }
 0x13f   : > { %p3256_p13 = por %p3255_p8, %p3254_p4 }
 0x140   : > { %p3252_p12 = pneg %p3251_p0 }
 0x141   : > { %p3258_p6 = por %p3257_p11, %p3256_p13 }
 0x143   : > { %p3259_p5 = pnand %p3258_p6, %p3252_p12 }
 0x145   : > { %3262 = shalt.err (!%p3259_p5)
}
 0x146   : > { %s3263_s30 = scalar_lea.vmem %s3960_s21, 256  ;;  %s3456_s16 = smov [#allocation8]  }
 0x147   : > { %p3264_p7 = scmp.ne.s32.totalorder %s3960_s21, %s3263_s30  ;;  %s3268_s19 = sshll.u32 %s3456_s16, 4  ;;  %s3269_s19 = int_to_ptr.vmem [resolvable:$false] %s3268_s19 }
 0x148   : > { %s3270_s15 = scalar_lea.vmem %s3269_s19, 512  ;;  %p3271_p3 = scmp.lt.s32.totalorder %s3960_s21, %s3269_s19 }
 0x149   : > { %p3266_p10 = pnand %p3264_p7, %p3250_p1  ;;  %p3272_p4 = scmp.lt.s32.totalorder %s3270_s15, %s3263_s30 }
 0x14b   : > { %p3267_p0 = pneg %p3266_p10  ;;  %p3273_p8 = por %p3272_p4, %p3271_p3 }
 0x14d   : > { %p3274_p13 = pnand %p3273_p8, %p3267_p0 }
 0x14f   : > { %3277 = shalt.err (!%p3274_p13)
}
 0x150   : > { %2861 = dma.hbm_to_vmem [thread:$0]  (!%p3966_p9), %s3958_s8, 256, %s3960_s21, %s3743_s9, %s4846_s7, %s4846_s7, %s4845_s5  }
 0x151   : > { %s4877_s0 = sld [smem:[#allocation36_spill]] }
 0x157   : > { %p4878_p1 = scmp.ne.s32.totalorder %s4877_s0, 0 }
 0x158   : > { %s4879_s12 = sld [smem:[#allocation31_spill]] (!%p4878_p1) }
 0x159   : > { %465 = sbr.rel (%p4878_p1) target bundleno = 1154 (0x482), region = 56 }
 0x15e   : > { %s467_s20 = sand.u32 (!%p4878_p1), 1, %s4879_s12  }
 0x15f   : > { %s4002_s29 = sshll.u32 (!%p4878_p1), %s467_s20, 4  ;;  %s468_s27 = scalar_lea.sflag (!%p4878_p1), [#allocation4], %s467_s20 }
 0x160   : > { %s471_s25 = scalar_lea.vmem [#allocation3], %s4002_s29 }
 0x161   : > { %3363 = dma.done.wait (%p3856_p2), %s468_s27, 256  }
 0x162   : > { %3365 = vsyncadd (%p3856_p2), %s468_s27, 4294967040  ;;  %s476_s9 = sand.u32 1, %s3583_s23   ;;  %s478_s5 = sand.u32 1, %s3408_s13  }
 0x163   : > { %s4013_s7 = sshll.u32 %s478_s5, 7  ;;  %s477_s8 = scalar_lea.sflag [#allocation7], %s476_s9 }
 0x164   : > { %s4016_s21 = scalar_lea.vmem [#allocation6], %s4013_s7  ;;  %p4880_p3 = scmp.ne.s32.totalorder %s4838_s2, 0 }
 0x166   : > { %3367 = dma.done.wait (%p4880_p3), %s477_s8, 2048  }
 0x167   : > { %3369 = vsyncadd (%p4880_p3), %s477_s8, 4294965248  ;;  %s4881_s28 = sld [smem:[#allocation27_spill]]  ;;  %p4882_p2 = scmp.ne.s32.totalorder %s4872_s24, 0 }
 0x16d   : > { %s487_s4 = sand.u32 1, %s4881_s28  }
 0x16e   : > { %s4023_s10 = sshll.u32 %s487_s4, 4 }
 0x16f   : > { %s489_s11 = scalar_lea.vmem [#allocation8], %s4023_s10 }
 0x170   : > { %3371 = dma.done.wait (%p4882_p2), %s477_s8, 256  }
 0x171   : > { %3373 = vsyncadd (%p4882_p2), %s477_s8, 4294967040  ;;  %p4883_p9 = scmp.eq.s32.totalorder %s3583_s23, 0 }
 0x173   : > { %3375 = dma.done.wait (%p4883_p9), [#allocation10], 2064   ;;  %p4884_p12 = pmov %p4883_p9 }
 0x174   : > { %p4885_p11 = pmov %p4883_p9 }
 0x175   : > { %3377 = vsyncadd (%p4884_p12), [#allocation10], 4294965232 }
 0x176   : > { %3379 = dma.done.wait (%p4885_p11), [#allocation13], 9232   ;;  %p4886_p6 = pmov %p4883_p9 }
 0x178   : > { %3381 = vsyncadd (%p4886_p6), [#allocation13], 4294958064  ;;  %p4887_p5 = pmov %p4886_p6 }
 0x17a   : > { %3383 = dma.done.wait (%p4887_p5), [#allocation16], 32   ;;  %p4888_p7 = pmov %p4887_p5 }
 0x17b   : > { %v584_v0 = vld [vmem:[#allocation9] sm:$0xff]  ;;  %v585_v1 = vld [vmem:[#allocation9 + $0x8] sm:$0xff]  ;;  %v586_v2 = vld [vmem:[#allocation9 + $0x10] sm:$0xff]  ;;  %v3457_v47 = vmov 0.0|0.0   ;;  %vm981_vm1 = vcmask 1046528   ;;  %vm971_vm3 = vcmask 1040384  }
 0x17c   : > { %3385 = vsyncadd (%p4888_p7), [#allocation16], 4294967264  ;;  %v2581_v3 = vpack.c.bf16 %v585_v1, %v584_v0  ;;  %v587_v4 = vld [vmem:[#allocation9 + $0x18] sm:$0xff]  ;;  %v588_v6 = vld [vmem:[#allocation9 + $0x20] sm:$0xff]  ;;  %2681 = vmatprep.subr.bf16.mxu0 %v3457_v47  ;;  %vm978_vm4 = vcmask 523264   ;;  %s3458_s23 = smov 64  }
 0x17d   : > { %v2585_v5 = vpack.c.bf16 %v587_v4, %v586_v2  ;;  %v589_v7 = vld [vmem:[#allocation9 + $0x28] sm:$0xff]  ;;  %v568_v9 = vld [vmem:[%s4016_s21] sm:$0xff]  ;;  %v590_v10 = vld [vmem:[#allocation9 + $0x30] sm:$0xff]  ;;  %s4889_s2 = sld [smem:[#allocation32_spill]]  ;;  %s4609_s30 = scalar_lea.vmem [#allocation18], %s4013_s7 }
 0x17e   : > { %2582 = vmatprep.subr.bf16.mxu1 %v2581_v3  ;;  %v2589_v8 = vpack.c.bf16 %v589_v7, %v588_v6  ;;  %v591_v11 = vld [vmem:[#allocation9 + $0x38] sm:$0xff]  ;;  %2519 = vmatprep.mubr.f32.mxu1 %v568_v9  ;;  %v592_v13 = vld [vmem:[#allocation9 + $0x40] sm:$0xff]  ;;  %v593_v14 = vld [vmem:[#allocation9 + $0x48] sm:$0xff]  ;;  %s4894_s16 = sld [smem:[#allocation33_spill]]  ;;  %s4895_s12 = sld [smem:[#allocation38_spill]] }
 0x17f   : > { %2584 = vmatpush3.bf16.msra.mxu1 %v2581_v3  ;;  %v2593_v12 = vpack.c.bf16 %v591_v11, %v590_v10  ;;  %v2597_v15 = vpack.c.bf16 %v593_v14, %v592_v13  ;;  %v594_v16 = vld [vmem:[#allocation9 + $0x50] sm:$0xff]  ;;  %v595_v17 = vld [vmem:[#allocation9 + $0x58] sm:$0xff]  ;;  %v596_v19 = vld [vmem:[#allocation9 + $0x60] sm:$0xff]  ;;  %s2135_s20 = sshll.u32 %s4609_s30, 4  ;;  %s4896_s9 = sld [smem:[#allocation51_spill]]  ;;  %s4682_s20 = int_to_ptr.vmem [resolvable:$true] %s2135_s20 }
 0x180   : > { %2586 = vmatprep.subr.bf16.mxu1 %v2585_v5  ;;  %v2601_v18 = vpack.c.bf16 %v595_v17, %v594_v16  ;;  %v597_v20 = vld [vmem:[#allocation9 + $0x68] sm:$0xff]  ;;  %v598_v22 = vld [vmem:[#allocation9 + $0x70] sm:$0xff]  ;;  %v599_v23 = vld [vmem:[#allocation9 + $0x78] sm:$0xff]  ;;  %s4693_s8 = scalar_lea.sflag [#allocation5], %s478_s5  ;;  %s3278_s28 = scalar_lea.vmem %s4682_s20, 2048 }
 0x181   : > { %v2605_v21 = vpack.c.bf16 %v597_v20, %v596_v19  ;;  %v2609_v24 = vpack.c.bf16 %v599_v23, %v598_v22  ;;  %v569_v25 = vld [vmem:[%s4016_s21 + $0x8] sm:$0xff]  ;;  %v570_v26 = vld [vmem:[%s4016_s21 + $0x10] sm:$0xff]  ;;  %v571_v27 = vld [vmem:[%s4016_s21 + $0x18] sm:$0xff]  ;;  %p3279_p4 = scmp.ne.s32.totalorder %s4682_s20, %s3278_s28  ;;  %s3459_s4 = smov [#allocation18]  }
 0x182   : > { %v572_v28 = vld [vmem:[%s4016_s21 + $0x20] sm:$0xff]  ;;  %v573_v29 = vld [vmem:[%s4016_s21 + $0x28] sm:$0xff]  ;;  %v574_v30 = vld [vmem:[%s4016_s21 + $0x30] sm:$0xff]  ;;  %s3282_s10 = sshll.u32 %s3459_s4, 4  ;;  %s3283_s10 = int_to_ptr.vmem [resolvable:$false] %s3282_s10 }
 0x183   : > { %2588 = vmatpush3.bf16.msra.mxu1 %v2585_v5  ;;  %v575_v31 = vld [vmem:[%s4016_s21 + $0x38] sm:$0xff]  ;;  %v576_v32 = vld [vmem:[%s4016_s21 + $0x40] sm:$0xff]  ;;  %v577_v33 = vld [vmem:[%s4016_s21 + $0x48] sm:$0xff]  ;;  %p948_p10 = scmp.eq.s32.totalorder %s4889_s2, 0  ;;  %p954_p0 = scmp.eq.s32.totalorder %s4889_s2, 1 }
 0x184   : > { %2590 = vmatprep.subr.bf16.mxu1 %v2589_v8  ;;  %v578_v34 = vld [vmem:[%s4016_s21 + $0x50] sm:$0xff]  ;;  %v579_v35 = vld [vmem:[%s4016_s21 + $0x58] sm:$0xff]  ;;  %v580_v36 = vld [vmem:[%s4016_s21 + $0x60] sm:$0xff]  ;;  %s2434_s19 = sshll.u32 %s4889_s2, 4  ;;  %s2429_s15 = sshll.u32 %s4894_s16, 5 }
 0x185   : > { %v581_v37 = vld [vmem:[%s4016_s21 + $0x68] sm:$0xff]  ;;  %v582_v38 = vld [vmem:[%s4016_s21 + $0x70] sm:$0xff]  ;;  %v583_v39 = vld [vmem:[%s4016_s21 + $0x78] sm:$0xff]  ;;  %s4152_s24 = scalar_select %p948_p10, 1, 0 }
 0x186   : > { %v839_v40 = vld [vmem:[%s471_s25] sm:$0xff]  ;;  %v840_v41 = vld [vmem:[%s471_s25 + $0x8] sm:$0xff]  ;;  %s4177_s6 = scalar_select %p954_p0, 1, 0 }
 0x187   : > { %2592 = vmatpush3.bf16.msra.mxu1 %v2589_v8  ;;  %v841_v42 = vld [vmem:[%s489_s11] sm:$0xff]  ;;  %v842_v43 = vld [vmem:[%s489_s11 + $0x8] sm:$0xff]  ;;  %s2132_s0 = sadd.s32 %s2434_s19, %s2429_s15  ;;  %p4897_p8 = scmp.ne.s32.totalorder %s4895_s12, 0 }
 0x188   : > { %2594 = vmatprep.subr.bf16.mxu1 %v2593_v12  ;;  %v1315_v44 = vld [vmem:[#allocation14 + $0xc0] sm:$0xff]  ;;  %v1316_v45 = vld [vmem:[#allocation14 + $0xc8] sm:$0xff]  ;;  %v1317_v46 = vld [vmem:[#allocation14 + $0xd0] sm:$0xff]  ;;  %s2430_s29 = sshll.u32 %s2132_s0, 7  ;;  %s3284_s11 = scalar_lea.vmem %s3283_s10, 4096 }
 0x189   : > { %v2646_v48 = vpack.c.bf16 %v1316_v45, %v1315_v44  ;;  %v1318_v49 = vld [vmem:[#allocation14 + $0xd8] sm:$0xff]  ;;  %v1319_v51 = vld [vmem:[#allocation14 + $0xe0] sm:$0xff]  ;;  %v1320_v52 = vld [vmem:[#allocation14 + $0xe8] sm:$0xff]  ;;  %s4688_s7 = scalar_lea.hbm %s4896_s9, %s2430_s29  ;;  %p3280_p13 = pnand %p3279_p4, %p4897_p8 }
 0x18a   : > { %v2649_v50 = vpack.c.bf16 %v1318_v49, %v1317_v46  ;;  %v1258_v53 = vld [vmem:[#allocation14] sm:$0xff]  ;;  %v1259_v54 = vld [vmem:[#allocation14 + $0x8] sm:$0xff]  ;;  %v2652_v55 = vpack.c.bf16 %v1320_v52, %v1319_v51  ;;  %v1260_v57 = vld [vmem:[#allocation14 + $0x10] sm:$0xff]  ;;  %p3285_p3 = scmp.lt.s32.totalorder %s4682_s20, %s3283_s10  ;;  %p3286_p2 = scmp.lt.s32.totalorder %s3284_s11, %s3278_s28 }
 0x18b   : > { %2596 = vmatpush3.bf16.msra.mxu1 %v2593_v12  ;;  %v2682_v56 = vpack.c.bf16 %v1259_v54, %v1258_v53  ;;  %v1261_v58 = vld [vmem:[#allocation14 + $0x18] sm:$0xff]  ;;  %v1321_v59 = vld [vmem:[#allocation14 + $0xf0] sm:$0xff]  ;;  %v1323_v63 = vld [vmem:[#allocation14 + $0x100] sm:$0xff]  ;;  %p3281_p1 = pneg %p3280_p13 }
 0x18c   : > { %2598 = vmatprep.subr.bf16.mxu1 %v2597_v15  ;;  %v1322_v60 = vld [vmem:[#allocation14 + $0xf8] sm:$0xff]  ;;  %v2685_v61 = vpack.c.bf16 %v1261_v58, %v1260_v57  ;;  %v1324_v0 = vld [vmem:[#allocation14 + $0x108] sm:$0xff]  ;;  %v1325_v2 = vld [vmem:[#allocation14 + $0x110] sm:$0xff]  ;;  %p3287_p9 = por %p3286_p2, %p3285_p3 }
 0x18d   : > { %2683 = vmatpush1.bf16.msra.mxu0 %v2682_v56  ;;  %v2655_v62 = vpack.c.bf16 %v1322_v60, %v1321_v59  ;;  %v2658_v1 = vpack.c.bf16 %v1324_v0, %v1323_v63  ;;  %v1328_v6 = vld [vmem:[#allocation14 + $0x128] sm:$0xff]  ;;  %v1330_v9 = vld [vmem:[#allocation14 + $0x138] sm:$0xff]  ;;  %v1331_v11 = vld [vmem:[#allocation14 + $0x140] sm:$0xff] }
 0x18e   : > { %2684 = vmatprep.subr.bf16.mxu0 %v3457_v47  ;;  %v1333_v14 = vld [vmem:[#allocation14 + $0x150] sm:$0xff]  ;;  %v1335_v17 = vld [vmem:[#allocation14 + $0x160] sm:$0xff]  ;;  %v4080_v20 = vld [vmem:[#allocation11] ss:$0 sm:$0xff]  ;;  %p3288_p12 = pnand %p3287_p9, %p3281_p1 }
 0x18f   : > { %2600 = vmatpush3.bf16.msra.mxu1 %v2597_v15  ;;  %v1262_v19 = vld [vmem:[#allocation14 + $0x20] sm:$0xff]  ;;  %v1263_v22 = vld [vmem:[#allocation14 + $0x28] sm:$0xff] }
 0x190   : > { %2602 = vmatprep.subr.bf16.mxu1 %v2601_v18  ;;  %v2688_v23 = vpack.c.bf16 %v1263_v22, %v1262_v19  ;;  %v1267_v44 = vld [vmem:[#allocation14 + $0x48] sm:$0xff] }
 0x191   : > { %2686 = vmatpush1.bf16.msra.mxu0 %v2685_v61  ;;  %v1268_v61 = vld [vmem:[#allocation14 + $0x50] sm:$0xff] }
 0x192   : > { %2687 = vmatprep.subr.bf16.mxu0 %v3457_v47 }
 0x193   : > { %2604 = vmatpush3.bf16.msra.mxu1 %v2601_v18 }
 0x194   : > { %2606 = vmatprep.subr.bf16.mxu1 %v2605_v21 }
 0x195   : > { %2689 = vmatpush1.bf16.msra.mxu0 %v2688_v23 }
 0x196   : > { %2690 = vmatprep.subr.bf16.mxu0 %v3457_v47 }
 0x197   : > { %2608 = vmatpush3.bf16.msra.mxu1 %v2605_v21 }
 0x198   : > { %2610 = vmatprep.subr.bf16.mxu1 %v2609_v24 }
 0x19b   : > { %2612 = vmatpush3.bf16.msra.mxu1 %v2609_v24 }
 0x19c   : > { %2614 = vmatprep.subr.bf16.mxu1 %v2581_v3 }
 0x19e   : > { %2520 = vmatmul.mubr.f32.vlgmr.msra.gmra.mrb[0].mxu1 %v569_v25  ;;  %v4082_v25 = vld [vmem:[#allocation12] ss:$0 sm:$0xff] }
 0x19f   : > { %2616 = vmatpush3.bf16.msra.mxu1 %v2581_v3  ;;  %2522 = vmatprep.mubr.f32.mxu1 %v570_v26  ;;  %v1326_v3 = vld [vmem:[#allocation14 + $0x118] sm:$0xff] }
 0x1a0   : > { %2618 = vmatprep.subr.bf16.mxu1 %v2585_v5  ;;  %v2661_v4 = vpack.c.bf16 %v1326_v3, %v1325_v2 }
 0x1a2   : > { %2523 = vmatmul.mubr.f32.gmra.mrb[2].mxu1 %v571_v27 }
 0x1a3   : > { %2620 = vmatpush3.bf16.msra.mxu1 %v2585_v5  ;;  %2525 = vmatprep.mubr.f32.mxu1 %v572_v28  ;;  %v1327_v5 = vld [vmem:[#allocation14 + $0x120] sm:$0xff]  ;;  %v1337_v28 = vld [vmem:[#allocation14 + $0x170] sm:$0xff] }
 0x1a4   : > { %2622 = vmatprep.subr.bf16.mxu1 %v2589_v8  ;;  %v2664_v7 = vpack.c.bf16 %v1328_v6, %v1327_v5 }
 0x1a6   : > { %2526 = vmatmul.mubr.f32.gmra.mrb[4].mxu1 %v573_v29  ;;  %v1338_v29 = vld [vmem:[#allocation14 + $0x178] sm:$0xff] }
 0x1a7   : > { %2624 = vmatpush3.bf16.msra.mxu1 %v2589_v8  ;;  %2528 = vmatprep.mubr.f32.mxu1 %v574_v30  ;;  %v1329_v8 = vld [vmem:[#allocation14 + $0x130] sm:$0xff] }
 0x1a8   : > { %2626 = vmatprep.subr.bf16.mxu1 %v2593_v12  ;;  %v2667_v10 = vpack.c.bf16 %v1330_v9, %v1329_v8  ;;  %v1264_v30 = vld [vmem:[#allocation14 + $0x30] sm:$0xff] }
 0x1aa   : > { %2529 = vmatmul.mubr.f32.gmra.mrb[6].mxu1 %v575_v31 }
 0x1ab   : > { %2628 = vmatpush3.bf16.msra.mxu1 %v2593_v12  ;;  %2531 = vmatprep.mubr.f32.mxu1 %v576_v32  ;;  %v1332_v12 = vld [vmem:[#allocation14 + $0x148] sm:$0xff]  ;;  %v2679_v32 = vpack.c.bf16 %v1338_v29, %v1337_v28 }
 0x1ac   : > { %2630 = vmatprep.subr.bf16.mxu1 %v2597_v15  ;;  %v2670_v13 = vpack.c.bf16 %v1332_v12, %v1331_v11  ;;  %v1271_v11 = vld [vmem:[#allocation14 + $0x68] sm:$0xff] }
 0x1ae   : > { %2532 = vmatmul.mubr.f32.gmra.mrb[8].mxu1 %v577_v33  ;;  %v1265_v33 = vld [vmem:[#allocation14 + $0x38] sm:$0xff] }
 0x1af   : > { %2632 = vmatpush3.bf16.msra.mxu1 %v2597_v15  ;;  %2534 = vmatprep.mubr.f32.mxu1 %v578_v34  ;;  %v1334_v15 = vld [vmem:[#allocation14 + $0x158] sm:$0xff] }
 0x1b0   : > { %2634 = vmatprep.subr.bf16.mxu1 %v2601_v18  ;;  %v2673_v16 = vpack.c.bf16 %v1334_v15, %v1333_v14 }
 0x1b2   : > { %2535 = vmatmul.mubr.f32.gmra.mrb[10].mxu1 %v579_v35  ;;  %v2691_v35 = vpack.c.bf16 %v1265_v33, %v1264_v30 }
 0x1b3   : > { %2636 = vmatpush3.bf16.msra.mxu1 %v2601_v18  ;;  %2537 = vmatprep.mubr.f32.mxu1 %v580_v36  ;;  %v1336_v18 = vld [vmem:[#allocation14 + $0x168] sm:$0xff] }
 0x1b4   : > { %2638 = vmatprep.subr.bf16.mxu1 %v2605_v21  ;;  %2692 = vmatpush1.bf16.msra.mxu0 %v2691_v35 }
 0x1b5   : > { %2693 = vmatprep.subr.bf16.mxu0 %v3457_v47 }
 0x1b6   : > { %2538 = vmatmul.mubr.f32.gmra.mrb[12].mxu1 %v581_v37 }
 0x1b7   : > { %2640 = vmatpush3.bf16.msra.mxu1 %v2605_v21  ;;  %2540 = vmatprep.mubr.f32.mxu1 %v582_v38  ;;  %v2676_v21 = vpack.c.bf16 %v1336_v18, %v1335_v17 }
 0x1b8   : > { %2642 = vmatprep.subr.bf16.mxu1 %v2609_v24 }
 0x1ba   : > { %2541 = vmatmul.mubr.f32.gmra.mrb[14].mxu1 %v583_v39 }
 0x1bb   : > { %2644 = vmatpush3.bf16.msra.mxu1 %v2609_v24  ;;  %2575 = vmatprep.mubr.f32.mxu1 %v839_v40 }
 0x1bc   : > { %2645 = vmatprep.subr.bf16.mxu1 %v3457_v47 }
 0x1be   : > { %2576 = vmatmul.mubr.f32.vlgmr.msra.gmra.mrb[16].mxu1 %v840_v41 }
 0x1bf   : > { %2578 = vmatprep.mubr.f32.mxu1 %v841_v42  ;;  %2647 = vmatpush1.bf16.msra.mxu1 %v2646_v48 }
 0x1c0   : > { %2648 = vmatprep.subr.bf16.mxu1 %v3457_v47 }
 0x1c2   : > { %2579 = vmatmul.mubr.f32.gmra.mrb[18].mxu1 %v842_v43  ;;  %v1266_v43 = vld [vmem:[#allocation14 + $0x40] sm:$0xff] }
 0x1c3   : > { %2650 = vmatpush1.bf16.msra.mxu1 %v2649_v50  ;;  %v2694_v48 = vpack.c.bf16 %v1267_v44, %v1266_v43 }
 0x1c4   : > { %2651 = vmatprep.subr.bf16.mxu1 %v3457_v47 }
 0x1c5   : > { %2695 = vmatpush1.bf16.msra.mxu0 %v2694_v48 }
 0x1c6   : > { %2696 = vmatprep.subr.bf16.mxu0 %v3457_v47 }
 0x1c7   : > { %2653 = vmatpush1.bf16.msra.mxu1 %v2652_v55 }
 0x1c8   : > { %2654 = vmatprep.subr.bf16.mxu1 %v3457_v47 }
 0x1cb   : > { %2656 = vmatpush1.bf16.msra.mxu1 %v2655_v62  ;;  %v1269_v62 = vld [vmem:[#allocation14 + $0x58] sm:$0xff] }
 0x1cc   : > { %2657 = vmatprep.subr.bf16.mxu1 %v3457_v47  ;;  %v2697_v6 = vpack.c.bf16 %v1269_v62, %v1268_v61 }
 0x1ce   : > { %2698 = vmatpush1.bf16.msra.mxu0 %v2697_v6 }
 0x1cf   : > { %2659 = vmatpush1.bf16.msra.mxu1 %v2658_v1  ;;  %2699 = vmatprep.subr.bf16.mxu0 %v3457_v47 }
 0x1d0   : > { %2660 = vmatprep.subr.bf16.mxu1 %v3457_v47 }
 0x1d3   : > { %2662 = vmatpush1.bf16.msra.mxu1 %v2661_v4 }
 0x1d4   : > { %2663 = vmatprep.subr.bf16.mxu1 %v3457_v47 }
 0x1d7   : > { %2665 = vmatpush1.bf16.msra.mxu1 %v2664_v7 }
 0x1d8   : > { %2666 = vmatprep.subr.bf16.mxu1 %v3457_v47 }
 0x1db   : > { %2668 = vmatpush1.bf16.msra.mxu1 %v2667_v10  ;;  %v1270_v10 = vld [vmem:[#allocation14 + $0x60] sm:$0xff] }
 0x1dc   : > { %2669 = vmatprep.subr.bf16.mxu1 %v3457_v47 }
 0x1df   : > { %2671 = vmatpush1.bf16.msra.mxu1 %v2670_v13 }
 0x1e0   : > { %2672 = vmatprep.subr.bf16.mxu1 %v3457_v47 }
 0x1e3   : > { %2674 = vmatpush1.bf16.msra.mxu1 %v2673_v16 }
 0x1e4   : > { %2675 = vmatprep.subr.bf16.mxu1 %v3457_v47 }
 0x1e7   : > { %2677 = vmatpush1.bf16.msra.mxu1 %v2676_v21 }
 0x1e8   : > { %2678 = vmatprep.subr.bf16.mxu1 %v3457_v47 }
 0x1eb   : > { %2680 = vmatpush1.bf16.msra.mxu1 %v2679_v32 }
 0x271   : > { %v2521_v24 = vpop.f32.mrb[0].mxu1 }
 0x272   : > { %v753_v26 = vmul.f32 %v2521_v24, %v4080_v20  ;;  %v666_v27 = vpop.f32.mrb[1].mxu1  ;;  %v2700_v24 = vpack.c.bf16 %v1271_v11, %v1270_v10 }
 0x273   : > { %v752_v31 = vmul.f32 %v4080_v20, %v666_v27 }
 0x274   : > { %v776_v34 = vadd.f32 %v4082_v25, %v753_v26  ;;  %2701 = vmatpush1.bf16.msra.mxu0 %v2700_v24 }
 0x275   : > { %v775_v36 = vadd.f32 %v4082_v25, %v752_v31  ;;  %v2524_v37 = vpop.f32.mrb[2].mxu1  ;;  %2702 = vmatprep.subr.bf16.mxu0 %v3457_v47 }
 0x276   : > { %v755_v38 = vmul.f32 %v2524_v37, %v4080_v20  ;;  %v676_v39 = vpop.f32.mrb[3].mxu1  ;;  %vm792_vm0 = vcmp.gt.f32.partialorder %v776_v34, 0.0  ;;  %v808_v40 = vmul.f32 0.1, %v776_v34 }
 0x277   : > { %v754_v41 = vmul.f32 %v4080_v20, %v676_v39  ;;  %vm791_vm2 = vcmp.gt.f32.partialorder %v775_v36, 0.0  ;;  %v807_v42 = vmul.f32 0.1, %v775_v36 }
 0x278   : > { %v778_v45 = vadd.f32 %v4082_v25, %v755_v38  ;;  %v824_v46 = vsel %vm792_vm0, %v776_v34, %v808_v40 }
 0x279   : > { %v777_v49 = vadd.f32 %v4082_v25, %v754_v41  ;;  %v2527_v50 = vpop.f32.mrb[4].mxu1  ;;  %v4095_v51 = vsel %vm791_vm2, %v775_v36, %v807_v42  ;;  %v1072_v52 = vrot.slane %v824_v46, 7  ;;  %v1136_v53 = vrot.slane %v824_v46, 1 }
 0x27a   : > { %v757_v54 = vmul.f32 %v2527_v50, %v4080_v20  ;;  %1006 = vrot.lane.b32.xlu1 %v4095_v51, %s3458_s23  ;;  %v1071_v55 = vrot.slane %v4095_v51, 7  ;;  %v1135_v56 = vrot.slane %v4095_v51, 1  ;;  %v686_v57 = vpop.f32.mrb[5].mxu1  ;;  %vm794_vm5 = vcmp.gt.f32.partialorder %v778_v45, 0.0 }
 0x27b   : > { %v756_v58 = vmul.f32 %v4080_v20, %v686_v57  ;;  %v1175_v59 = vsel %vm981_vm1, %v1136_v53, 0.0  ;;  %v810_v60 = vmul.f32 0.1, %v778_v45  ;;  %vm793_vm6 = vcmp.gt.f32.partialorder %v777_v49, 0.0 }
 0x27c   : > { %v780_v63 = vadd.f32 %v4082_v25, %v757_v54  ;;  %1184 = vst.msk [vmem:[#allocation2 + $0x38] sm:$0xff] %vm978_vm4, %v1175_v59  ;;  %v4110_v0 = vsel %vm971_vm3, %v1071_v55, %v1072_v52  ;;  %v1137_v1 = vsel %vm981_vm1, %v1135_v56, %v1136_v53  ;;  %v809_v5 = vmul.f32 0.1, %v777_v49 }
 0x27d   : > { %v779_v2 = vadd.f32 %v4082_v25, %v756_v58  ;;  %v2530_v3 = vpop.f32.mrb[6].mxu1  ;;  %1183 = vst.msk [vmem:[#allocation2 + $0x28] sm:$0xff] %vm978_vm4, %v1137_v1  ;;  %v826_v4 = vsel %vm794_vm5, %v778_v45, %v810_v60  ;;  %v950_v58 = vstv %s4152_s24 }
 0x27e   : > { %v759_v7 = vmul.f32 %v2530_v3, %v4080_v20  ;;  %1008 = vrot.lane.b32.xlu1 %v824_v46, %s3458_s23  ;;  %v696_v8 = vpop.f32.mrb[7].mxu1  ;;  %v1139_v9 = vrot.slane %v826_v4, 1  ;;  %vm796_vm7 = vcmp.gt.f32.partialorder %v780_v63, 0.0  ;;  %v1075_v13 = vrot.slane %v826_v4, 7 }
 0x27f   : > { %v758_v12 = vmul.f32 %v4080_v20, %v696_v8  ;;  %v812_v14 = vmul.f32 0.1, %v780_v63  ;;  %v4120_v15 = vsel %vm793_vm6, %v777_v49, %v809_v5  ;;  %vm795_vm8 = vcmp.gt.f32.partialorder %v779_v2, 0.0 }
 0x280   : > { %v782_v16 = vadd.f32 %v4082_v25, %v759_v7  ;;  %v1176_v17 = vsel %vm981_vm1, %v1139_v9, 0.0  ;;  %v1074_v18 = vrot.slane %v4120_v15, 7  ;;  %v1138_v19 = vrot.slane %v4120_v15, 1 }
 0x281   : > { %v2533_v21 = vpop.f32.mrb[8].mxu1  ;;  %1186 = vst.msk [vmem:[#allocation2 + $0x58] sm:$0xff] %vm978_vm4, %v1176_v17  ;;  %v828_v22 = vsel %vm796_vm7, %v780_v63, %v812_v14  ;;  %v811_v23 = vmul.f32 0.1, %v779_v2  ;;  %v781_v26 = vadd.f32 %v4082_v25, %v758_v12  ;;  %vm4195_vm15 = vcmp.eq.s32.totalorder %v950_v58, 1 }
 0x282   : > { %v761_v27 = vmul.f32 %v2533_v21, %v4080_v20  ;;  %1012 = vrot.lane.b32.xlu1 %v826_v4, %s3458_s23  ;;  %v706_v28 = vpop.f32.mrb[9].mxu1  ;;  %v1142_v29 = vrot.slane %v828_v22, 1  ;;  %vm798_vm9 = vcmp.gt.f32.partialorder %v782_v16, 0.0  ;;  %v1078_v31 = vrot.slane %v828_v22, 7 }
 0x283   : > { %v760_v30 = vmul.f32 %v4080_v20, %v706_v28  ;;  %v814_v32 = vmul.f32 0.1, %v782_v16  ;;  %v4136_v33 = vsel %vm971_vm3, %v1074_v18, %v1075_v13  ;;  %v1140_v37 = vsel %vm981_vm1, %v1138_v19, %v1139_v9  ;;  %v4362_v51 = vld [vmem:[#allocation2 + $0x38] sm:$0xff] }
 0x284   : > { %v784_v34 = vadd.f32 %v4082_v25, %v761_v27  ;;  %v4139_v35 = vld [vmem:[#allocation2 + $0x28] sm:$0xff]  ;;  %v1177_v36 = vsel %vm981_vm1, %v1142_v29, 0.0  ;;  %v4144_v38 = vsel %vm795_vm8, %v779_v2, %v811_v23  ;;  %1185 = vst.msk [vmem:[#allocation2 + $0x48] sm:$0xff] %vm978_vm4, %v1140_v37  ;;  %vm797_vm11 = vcmp.gt.f32.partialorder %v781_v26, 0.0 }
 0x285   : > { %v2536_v39 = vpop.f32.mrb[10].mxu1  ;;  %2376 = vmatprep.mubr.msk.f32.mxu1 %vm978_vm4, %v4139_v35  ;;  %1188 = vst.msk [vmem:[#allocation2 + $0x78] sm:$0xff] %vm978_vm4, %v1177_v36  ;;  %v830_v40 = vsel %vm798_vm9, %v782_v16, %v814_v32  ;;  %v1077_v41 = vrot.slane %v4144_v38, 7  ;;  %v1141_v42 = vrot.slane %v4144_v38, 1  ;;  %v783_v43 = vadd.f32 %v4082_v25, %v760_v30 }
 0x286   : > { %v763_v44 = vmul.f32 %v2536_v39, %v4080_v20  ;;  %1016 = vrot.lane.b32.xlu1 %v828_v22, %s3458_s23  ;;  %v716_v45 = vpop.f32.mrb[11].mxu1  ;;  %v1145_v46 = vrot.slane %v830_v40, 1  ;;  %vm800_vm10 = vcmp.gt.f32.partialorder %v784_v34, 0.0  ;;  %v816_v48 = vmul.f32 0.1, %v784_v34 }
 0x287   : > { %v4164_v49 = vsel %vm971_vm3, %v1077_v41, %v1078_v31  ;;  %v1143_v53 = vsel %vm981_vm1, %v1141_v42, %v1142_v29  ;;  %v762_v54 = vmul.f32 %v4080_v20, %v716_v45  ;;  %v813_v59 = vmul.f32 0.1, %v781_v26 }
 0x288   : > { %v786_v50 = vadd.f32 %v4082_v25, %v763_v44  ;;  %v1178_v52 = vsel %vm981_vm1, %v1145_v46, 0.0  ;;  %v832_v57 = vsel %vm800_vm10, %v784_v34, %v816_v48  ;;  %1187 = vst.msk [vmem:[#allocation2 + $0x68] sm:$0xff] %vm978_vm4, %v1143_v53  ;;  %vm799_vm13 = vcmp.gt.f32.partialorder %v783_v43, 0.0 }
 0x289   : > { %v2539_v56 = vpop.f32.mrb[12].mxu1  ;;  %1190 = vst.msk [vmem:[#allocation2 + $0x98] sm:$0xff] %vm978_vm4, %v1178_v52  ;;  %v1148_v62 = vrot.slane %v832_v57, 1  ;;  %v1081_v63 = vrot.slane %v830_v40, 7  ;;  %v4180_v2 = vsel %vm797_vm11, %v781_v26, %v813_v59  ;;  %v815_v3 = vmul.f32 0.1, %v783_v43 }
 0x28a   : > { %v765_v60 = vmul.f32 %v2539_v56, %v4080_v20  ;;  %1020 = vrot.lane.b32.xlu1 %v830_v40, %s3458_s23  ;;  %v726_v61 = vpop.f32.mrb[13].mxu1  ;;  %vm802_vm12 = vcmp.gt.f32.partialorder %v786_v50, 0.0  ;;  %v818_v1 = vmul.f32 0.1, %v786_v50  ;;  %v1080_v6 = vrot.slane %v4180_v2, 7 }
 0x28b   : > { %v1179_v5 = vsel %vm981_vm1, %v1148_v62, 0.0  ;;  %v1144_v7 = vrot.slane %v4180_v2, 1  ;;  %v785_v8 = vadd.f32 %v4082_v25, %v762_v54  ;;  %v4190_v11 = vsel %vm799_vm13, %v783_v43, %v815_v3 }
 0x28c   : > { %v788_v4 = vadd.f32 %v4082_v25, %v765_v60  ;;  %1192 = vst.msk [vmem:[#allocation2 + $0xb8] sm:$0xff] %vm978_vm4, %v1179_v5  ;;  %v4188_v10 = vsel %vm802_vm12, %v786_v50, %v818_v1  ;;  %v956_v17 = vstv %s4177_s6  ;;  %v764_v19 = vmul.f32 %v4080_v20, %v726_v61 }
 0x28d   : > { %v2542_v9 = vpop.f32.mrb[14].mxu1  ;;  %v1151_v14 = vrot.slane %v4188_v10, 1  ;;  %v1084_v21 = vrot.slane %v832_v57, 7  ;;  %v4204_v23 = vsel %vm971_vm3, %v1080_v6, %v1081_v63  ;;  %v1146_v27 = vsel %vm981_vm1, %v1144_v7, %v1145_v46 }
 0x28e   : > { %v767_v12 = vmul.f32 %v2542_v9, %v4080_v20  ;;  %1024 = vrot.lane.b32.xlu1 %v832_v57, %s3458_s23  ;;  %v736_v13 = vpop.f32.mrb[15].mxu1  ;;  %vm804_vm14 = vcmp.gt.f32.partialorder %v788_v4, 0.0  ;;  %v820_v22 = vmul.f32 0.1, %v788_v4  ;;  %v1083_v28 = vrot.slane %v4190_v11, 7  ;;  %1189 = vst.msk [vmem:[#allocation2 + $0x88] sm:$0xff] %vm978_vm4, %v1146_v27 }
 0x28f   : > { %v1180_v26 = vsel %vm981_vm1, %v1151_v14, 0.0  ;;  %v1147_v31 = vrot.slane %v4190_v11, 1  ;;  %vm801_vm0 = vcmp.gt.f32.partialorder %v785_v8, 0.0  ;;  %v817_v32 = vmul.f32 0.1, %v785_v8 }
 0x290   : > { %v790_v24 = vadd.f32 %v4082_v25, %v767_v12  ;;  %1194 = vst.msk [vmem:[#allocation2 + $0xd8] sm:$0xff] %vm978_vm4, %v1180_v26  ;;  %v4211_v30 = vsel %vm804_vm14, %v788_v4, %v820_v22  ;;  %v1087_v36 = vrot.slane %v4188_v10, 7  ;;  %vm4220_vm5 = vcmp.eq.s32.totalorder %v956_v17, 1 }
 0x291   : > { %v2577_v29 = vpop.f32.mrb[16].mxu1  ;;  %v1154_v39 = vrot.slane %v4211_v30, 1  ;;  %v766_v42 = vmul.f32 %v4080_v20, %v736_v13  ;;  %v4229_v45 = vsel %vm971_vm3, %v1083_v28, %v1084_v21  ;;  %v1149_v50 = vsel %vm981_vm1, %v1147_v31, %v1148_v62 }
 0x292   : > { %v929_v34 = vmul.f32 %v2577_v29, %v4080_v20  ;;  %1028 = vrot.lane.b32.xlu1 %v4188_v10, %s3458_s23  ;;  %v909_v37 = vpop.f32.mrb[17].mxu1  ;;  %vm806_vm2 = vcmp.gt.f32.partialorder %v790_v24, 0.0  ;;  %v822_v44 = vmul.f32 0.1, %v790_v24  ;;  %v4237_v52 = vsel %vm801_vm0, %v785_v8, %v817_v32  ;;  %1191 = vst.msk [vmem:[#allocation2 + $0xa8] sm:$0xff] %vm978_vm4, %v1149_v50 }
 0x293   : > { %v928_v43 = vmul.f32 %v4080_v20, %v909_v37  ;;  %v1181_v48 = vsel %vm981_vm1, %v1154_v39, 0.0  ;;  %v1086_v57 = vrot.slane %v4237_v52, 7  ;;  %v1150_v58 = vrot.slane %v4237_v52, 1 }
 0x294   : > { %v933_v46 = vadd.f32 %v4082_v25, %v929_v34  ;;  %1196 = vst.msk [vmem:[#allocation2 + $0xf8] sm:$0xff] %vm978_vm4, %v1181_v48  ;;  %v4241_v56 = vsel %vm806_vm2, %v790_v24, %v822_v44  ;;  %v787_v59 = vadd.f32 %v4082_v25, %v764_v19  ;;  %v789_v4 = vadd.f32 %v4082_v25, %v766_v42  ;;  %v1274_v44 = vld [vmem:[#allocation14 + $0x80] sm:$0xff] }
 0x295   : > { %v932_v53 = vadd.f32 %v4082_v25, %v928_v43  ;;  %v2580_v54 = vpop.f32.mrb[18].mxu1  ;;  %v1157_v62 = vrot.slane %v4241_v56, 1  ;;  %v4254_v3 = vsel %vm971_vm3, %v1086_v57, %v1087_v36  ;;  %v1152_v12 = vsel %vm981_vm1, %v1150_v58, %v1151_v14  ;;  %v1273_v36 = vld [vmem:[#allocation14 + $0x78] sm:$0xff] }
 0x296   : > { %v941_v60 = vmul.f32 0.1, %v933_v46  ;;  %1032 = vrot.lane.b32.xlu1 %v4211_v30, %s3458_s23  ;;  %v931_v61 = vmul.f32 %v2580_v54, %v4080_v20  ;;  %v919_v63 = vpop.f32.mrb[19].mxu1  ;;  %vm937_vm7 = vcmp.gt.f32.partialorder %v933_v46, 0.0  ;;  %1193 = vst.msk [vmem:[#allocation2 + $0xc8] sm:$0xff] %vm978_vm4, %v1152_v12  ;;  %vm803_vm9 = vcmp.gt.f32.partialorder %v787_v59, 0.0 }
 0x297   : > { %v940_v1 = vmul.f32 0.1, %v932_v53  ;;  %vm936_vm6 = vcmp.gt.f32.partialorder %v932_v53, 0.0  ;;  %v1182_v7 = vsel %vm981_vm1, %v1157_v62, 0.0  ;;  %v930_v13 = vmul.f32 %v4080_v20, %v919_v63  ;;  %v1276_v12 = vld [vmem:[#allocation14 + $0x90] sm:$0xff] }
 0x298   : > { %v935_v5 = vadd.f32 %v4082_v25, %v931_v61  ;;  %v945_v8 = vsel %vm937_vm7, %v933_v46, %v941_v60  ;;  %1198 = vst.msk [vmem:[#allocation2 + $0x118] sm:$0xff] %vm978_vm4, %v1182_v7  ;;  %v819_v16 = vmul.f32 0.1, %v787_v59  ;;  %v1090_v29 = vrot.slane %v4211_v30, 7  ;;  %v1277_v30 = vld [vmem:[#allocation14 + $0x98] sm:$0xff] }
 0x299   : > { %v944_v9 = vsel %vm936_vm6, %v932_v53, %v940_v1  ;;  %v953_v10 = vsel %vm4195_vm15, 0.0, %v945_v8  ;;  %v934_v20 = vadd.f32 %v4082_v25, %v930_v13  ;;  %v1272_v25 = vld [vmem:[#allocation14 + $0x70] sm:$0xff]  ;;  %vm805_vm10 = vcmp.gt.f32.partialorder %v789_v4, 0.0  ;;  %v1275_v53 = vld [vmem:[#allocation14 + $0x88] sm:$0xff] }
 0x29a   : > { %v943_v17 = vmul.f32 0.1, %v935_v5  ;;  %1036 = vrot.lane.b32.xlu1 %v4241_v56, %s3458_s23  ;;  %v4270_v19 = vsel %vm4195_vm15, 0.0, %v944_v9  ;;  %v973_v21 = vrot.slane %v953_v10, 7  ;;  %v983_v22 = vrot.slane %v953_v10, 1 }
 0x29b   : > { %962 = vrot.lane.b32.xlu0 %v4270_v19, %s3458_s23  ;;  %v972_v24 = vrot.slane %v4270_v19, 7  ;;  %v982_v14 = vrot.slane %v4270_v19, 1  ;;  %vm939_vm8 = vcmp.gt.f32.partialorder %v935_v5, 0.0  ;;  %v942_v42 = vmul.f32 0.1, %v934_v20 }
 0x29c   : > { %v987_v26 = vsel %vm981_vm1, %v983_v22, 0.0  ;;  %v947_v27 = vsel %vm939_vm8, %v935_v5, %v943_v17  ;;  %v4291_v43 = vsel %vm803_vm9, %v787_v59, %v819_v16  ;;  %v821_v50 = vmul.f32 0.1, %v789_v4  ;;  %v1280_v16 = vld [vmem:[#allocation14 + $0xb0] sm:$0xff] }
 0x29d   : > { %989 = vst.msk [vmem:[#allocation2 + $0x18] sm:$0xff] %vm978_vm4, %v987_v26  ;;  %v4284_v31 = vsel %vm971_vm3, %v972_v24, %v973_v21  ;;  %v984_v32 = vsel %vm981_vm1, %v982_v14, %v983_v22  ;;  %v959_v34 = vsel %vm4220_vm5, 0.0, %v947_v27  ;;  %v1089_v46 = vrot.slane %v4291_v43, 7  ;;  %v1279_v26 = vld [vmem:[#allocation14 + $0xa8] sm:$0xff] }
 0x29e   : > { %988 = vst.msk [vmem:[#allocation2 + $0x8] sm:$0xff] %vm978_vm4, %v984_v32  ;;  %1203 = vrot.lane.b32.xlu1 %v959_v34, %s3458_s23  ;;  %v1219_v37 = vrot.slane %v959_v34, 1  ;;  %v1153_v48 = vrot.slane %v4291_v43, 1  ;;  %v1093_v54 = vrot.slane %v4241_v56, 7  ;;  %vm938_vm11 = vcmp.gt.f32.partialorder %v934_v20, 0.0 }
 0x29f   : > { %964 = vrot.lane.b32.xlu0 %v953_v10, %s3458_s23  ;;  %v2703_v60 = vpack.c.bf16 %v1273_v36, %v1272_v25  ;;  %v1211_v61 = vrot.slane %v959_v34, 7  ;;  %v4302_v59 = vsel %vm971_vm3, %v1089_v46, %v1090_v29  ;;  %v837_v1 = vsel %vm805_vm10, %v789_v4, %v821_v50  ;;  %v1281_v29 = vld [vmem:[#allocation14 + $0xb8] sm:$0xff] }
 0x2a0   : > { %v1223_v58 = vsel %vm981_vm1, %v1219_v37, 0.0  ;;  %v1155_v63 = vsel %vm981_vm1, %v1153_v48, %v1154_v39  ;;  %v1092_v5 = vrot.slane %v837_v1, 7  ;;  %v1156_v7 = vrot.slane %v837_v1, 1 }
 0x2a1   : > { %1225 = vst.msk [vmem:[#allocation2 + $0x138] sm:$0xff] %vm978_vm4, %v1223_v58  ;;  %1195 = vst.msk [vmem:[#allocation2 + $0xe8] sm:$0xff] %vm978_vm4, %v1155_v63  ;;  %v946_v8 = vsel %vm938_vm11, %v934_v20, %v942_v42  ;;  %2704 = vmatpush1.bf16.msra.mxu0 %v2703_v60  ;;  %v2706_v9 = vpack.c.bf16 %v1275_v53, %v1274_v44  ;;  %v2709_v20 = vpack.c.bf16 %v1277_v30, %v1276_v12  ;;  %v1759_v58 = vld [vmem:[#allocation14 + $0x180] sm:$0xff]  ;;  %v1760_v60 = vld [vmem:[#allocation14 + $0x188] sm:$0xff] }
 0x2a2   : > { %v958_v10 = vsel %vm4220_vm5, 0.0, %v946_v8  ;;  %2705 = vmatprep.subr.bf16.mxu0 %v3457_v47  ;;  %v4314_v39 = vsel %vm971_vm3, %v1092_v5, %v1093_v54  ;;  %v4317_v4 = vsel %vm971_vm3, 0.0, %v1092_v5  ;;  %v1158_v13 = vsel %vm981_vm1, %v1156_v7, %v1157_v62  ;;  %v1278_v62 = vld [vmem:[#allocation14 + $0xa0] sm:$0xff]  ;;  %v1765_v30 = vld [vmem:[#allocation14 + $0x1b0] sm:$0xff] }
 0x2a3   : > { %1010 = vrot.lane.b32.xlu0 %v4120_v15, %s3458_s23  ;;  %v1210_v17 = vrot.slane %v958_v10, 7  ;;  %1197 = vst.msk [vmem:[#allocation2 + $0x108] sm:$0xff] %vm978_vm4, %v1158_v13  ;;  %v1218_v40 = vrot.slane %v958_v10, 1  ;;  %v2712_v27 = vpack.c.bf16 %v1279_v26, %v1278_v62  ;;  %v2715_v32 = vpack.c.bf16 %v1281_v29, %v1280_v16  ;;  %v1763_v8 = vld [vmem:[#allocation14 + $0x1a0] sm:$0xff]  ;;  %v1769_v62 = vld [vmem:[#allocation14 + $0x1d0] sm:$0xff]  ;;  %v1770_v26 = vld [vmem:[#allocation14 + $0x1d8] sm:$0xff] }
 0x2a4   : > { %v1111_v25 = vsel %vm971_vm3, 0.0, %v1071_v55  ;;  %v2718_v19 = vpack.c.bf16 %v1760_v60, %v1759_v58  ;;  %v1112_v63 = vsel %vm971_vm3, 0.0, %v1074_v18  ;;  %v1229_v5 = vld [vmem:[#allocation2 + $0x18] sm:$0xff]  ;;  %v1113_v15 = vsel %vm971_vm3, 0.0, %v1077_v41  ;;  %v1779_v58 = vld [vmem:[#allocation14 + $0x220] sm:$0xff]  ;;  %v1780_v60 = vld [vmem:[#allocation14 + $0x228] sm:$0xff] }
 0x2a5   : > { %v1227_v21 = vld [vmem:[#allocation2 + $0x8] sm:$0xff]  ;;  %v4325_v22 = vsel %vm971_vm3, %v1210_v17, %v1211_v61  ;;  %v4328_v14 = vsel %vm971_vm3, 0.0, %v1210_v17  ;;  %2707 = vmatpush1.bf16.msra.mxu0 %v2706_v9  ;;  %v1220_v56 = vsel %vm981_vm1, %v1218_v40, %v1219_v37  ;;  %vm968_vm1 = vcmask 1048064   ;;  %v1761_v61 = vld [vmem:[#allocation14 + $0x190] sm:$0xff] }
 0x2a6   : > { %2392 = vmatprep.mubr.msk.f32.mxu0 %vm978_vm4, %v1227_v21  ;;  %2708 = vmatprep.subr.bf16.mxu0 %v3457_v47  ;;  %1224 = vst.msk [vmem:[#allocation2 + $0x128] sm:$0xff] %vm978_vm4, %v1220_v56  ;;  %v1764_v9 = vld [vmem:[#allocation14 + $0x1a8] sm:$0xff]  ;;  %v1115_v13 = vsel %vm971_vm3, 0.0, %v1083_v28  ;;  %v1767_v21 = vld [vmem:[#allocation14 + $0x1c0] sm:$0xff]  ;;  %v1117_v16 = vsel %vm971_vm3, 0.0, %v1089_v46 }
 0x2a7   : > { %1014 = vrot.lane.b32.xlu0 %v4144_v38, %s3458_s23  ;;  %v2724_v12 = vpack.c.bf16 %v1764_v9, %v1763_v8  ;;  %v1114_v38 = vsel %vm971_vm3, 0.0, %v1080_v6  ;;  %v1768_v40 = vld [vmem:[#allocation14 + $0x1c8] sm:$0xff] }
 0x2a8   : > { %v2730_v28 = vpack.c.bf16 %v1768_v40, %v1767_v21 }
 0x2a9   : > { %2710 = vmatpush1.bf16.msra.mxu0 %v2709_v20  ;;  %v1116_v20 = vsel %vm971_vm3, 0.0, %v1086_v57  ;;  %v2733_v57 = vpack.c.bf16 %v1770_v26, %v1769_v62 }
 0x2aa   : > { %2711 = vmatprep.subr.bf16.mxu0 %v3457_v47 }
 0x2ab   : > { %1018 = vrot.lane.b32.xlu0 %v4180_v2, %s3458_s23 }
 0x2ad   : > { %2713 = vmatpush1.bf16.msra.mxu0 %v2712_v27  ;;  %v4458_v27 = vld [vmem:[#allocation2 + $0x78] sm:$0xff] }
 0x2ae   : > { %2714 = vmatprep.subr.bf16.mxu0 %v3457_v47 }
 0x2af   : > { %1022 = vrot.lane.b32.xlu0 %v4190_v11, %s3458_s23 }
 0x2b1   : > { %2716 = vmatpush1.bf16.msra.mxu0 %v2715_v32  ;;  %v1771_v32 = vld [vmem:[#allocation14 + $0x1e0] sm:$0xff] }
 0x2b2   : > { %2717 = vmatprep.subr.bf16.mxu0 %v3457_v47 }
 0x2b3   : > { %1026 = vrot.lane.b32.xlu0 %v4237_v52, %s3458_s23 }
 0x2b7   : > { %1030 = vrot.lane.b32.xlu0 %v4291_v43, %s3458_s23 }
 0x2bb   : > { %1034 = vrot.lane.b32.xlu0 %v837_v1, %s3458_s23 }
 0x2bf   : > { %1201 = vrot.lane.b32.xlu0 %v958_v10, %s3458_s23 }
 0x2ec   : > { %v1007_v34 = vpop.permute.xlu1 %1006 }
 0x2ed   : > { %1055 = vst.msk [vmem:[#allocation2 + $0x20] sm:$0xff] %vm968_vm1, %v1007_v34  ;;  %v1772_v34 = vld [vmem:[#allocation14 + $0x1e8] sm:$0xff] }
 0x2ee   : > { %1119 = vst.msk [vmem:[#allocation2 + $0x20] sm:$0xff] %vm978_vm4, %v1111_v25  ;;  %v4474_v25 = vld [vmem:[#allocation2 + $0x88] sm:$0xff]  ;;  %v2736_v46 = vpack.c.bf16 %v1772_v34, %v1771_v32 }
 0x2f0   : > { %v1009_v36 = vpop.permute.xlu1 %1008 }
 0x2f1   : > { %1056 = vst.msk [vmem:[#allocation2 + $0x30] sm:$0xff] %vm968_vm1, %v1009_v36 }
 0x2f2   : > { %1120 = vst.msk [vmem:[#allocation2 + $0x30] sm:$0xff] %vm978_vm4, %v4110_v0  ;;  %v4372_v0 = vld [vmem:[#allocation2 + $0x48] sm:$0xff] }
 0x2f4   : > { %v1013_v37 = vpop.permute.xlu1 %1012 }
 0x2f5   : > { %1058 = vst.msk [vmem:[#allocation2 + $0x50] sm:$0xff] %vm968_vm1, %v1013_v37  ;;  %v4357_v42 = vld [vmem:[#allocation2 + $0x20] sm:$0xff]  ;;  %v1773_v37 = vld [vmem:[#allocation14 + $0x1f0] sm:$0xff] }
 0x2f6   : > { %1122 = vst.msk [vmem:[#allocation2 + $0x50] sm:$0xff] %vm978_vm4, %v4136_v33  ;;  %1452 = vmatmul.mubr.f32.vlgmr.msra.gmra.mrb[20].mxu1 %v4357_v42 }
 0x2f7   : > { %2377 = vmatprep.mubr.msk.f32.mxu1 %vm978_vm4, %v4362_v51 }
 0x2f8   : > { %v1017_v55 = vpop.permute.xlu1 %1016 }
 0x2f9   : > { %1060 = vst.msk [vmem:[#allocation2 + $0x70] sm:$0xff] %vm968_vm1, %v1017_v55  ;;  %v4367_v44 = vld [vmem:[#allocation2 + $0x30] sm:$0xff] }
 0x2fa   : > { %1124 = vst.msk [vmem:[#allocation2 + $0x70] sm:$0xff] %vm978_vm4, %v4164_v49  ;;  %1457 = vmatmul.mubr.f32.gmra.mrb[22].mxu1 %v4367_v44 }
 0x2fb   : > { %2378 = vmatprep.mubr.msk.f32.mxu1 %vm978_vm4, %v4372_v0 }
 0x2fc   : > { %v1021_v33 = vpop.permute.xlu1 %1020 }
 0x2fd   : > { %1062 = vst.msk [vmem:[#allocation2 + $0x90] sm:$0xff] %vm968_vm1, %v1021_v33  ;;  %v4436_v17 = vld [vmem:[#allocation2 + $0x50] sm:$0xff] }
 0x2fe   : > { %1126 = vst.msk [vmem:[#allocation2 + $0x90] sm:$0xff] %vm978_vm4, %v4204_v23 }
 0x300   : > { %v1025_v48 = vpop.permute.xlu1 %1024 }
 0x301   : > { %1064 = vst.msk [vmem:[#allocation2 + $0xb0] sm:$0xff] %vm968_vm1, %v1025_v48  ;;  %v4468_v29 = vld [vmem:[#allocation2 + $0x70] sm:$0xff] }
 0x302   : > { %1128 = vst.msk [vmem:[#allocation2 + $0xb0] sm:$0xff] %vm978_vm4, %v4229_v45  ;;  %v977_v45 = vsel %vm971_vm3, 0.0, %v972_v24  ;;  %v1776_v48 = vld [vmem:[#allocation14 + $0x208] sm:$0xff] }
 0x304   : > { %v1029_v49 = vpop.permute.xlu1 %1028 }
 0x305   : > { %1066 = vst.msk [vmem:[#allocation2 + $0xd0] sm:$0xff] %vm968_vm1, %v1029_v49  ;;  %v4495_v33 = vld [vmem:[#allocation2 + $0x90] sm:$0xff]  ;;  %v4502_v49 = vld [vmem:[#allocation2 + $0xa8] sm:$0xff] }
 0x306   : > { %1130 = vst.msk [vmem:[#allocation2 + $0xd0] sm:$0xff] %vm978_vm4, %v4254_v3 }
 0x308   : > { %v1033_v50 = vpop.permute.xlu1 %1032 }
 0x309   : > { %1068 = vst.msk [vmem:[#allocation2 + $0xf0] sm:$0xff] %vm968_vm1, %v1033_v50 }
 0x30a   : > { %1132 = vst.msk [vmem:[#allocation2 + $0xf0] sm:$0xff] %vm978_vm4, %v4302_v59  ;;  %v1762_v59 = vld [vmem:[#allocation14 + $0x198] sm:$0xff] }
 0x30b   : > { %v2721_v7 = vpack.c.bf16 %v1762_v59, %v1761_v61  ;;  %v1781_v59 = vld [vmem:[#allocation14 + $0x230] sm:$0xff] }
 0x30c   : > { %v1037_v53 = vpop.permute.xlu1 %1036 }
 0x30d   : > { %1070 = vst.msk [vmem:[#allocation2 + $0x110] sm:$0xff] %vm968_vm1, %v1037_v53  ;;  %v963_v23 = vpop.permute.xlu0 %962 }
 0x30e   : > { %1134 = vst.msk [vmem:[#allocation2 + $0x110] sm:$0xff] %vm978_vm4, %v4314_v39  ;;  %v1766_v39 = vld [vmem:[#allocation14 + $0x1b8] sm:$0xff] }
 0x30f   : > { %969 = vst.msk [vmem:[#allocation2] sm:$0xff] %vm968_vm1, %v963_v23  ;;  %v2727_v6 = vpack.c.bf16 %v1766_v39, %v1765_v30  ;;  %v1777_v23 = vld [vmem:[#allocation14 + $0x210] sm:$0xff] }
 0x310   : > { %979 = vst.msk [vmem:[#allocation2] sm:$0xff] %vm978_vm4, %v977_v45  ;;  %v1204_v3 = vpop.permute.xlu1 %1203  ;;  %v4513_v45 = vld [vmem:[#allocation2 + $0xb8] sm:$0xff] }
 0x311   : > { %v965_v54 = vpop.permute.xlu0 %964  ;;  %1209 = vst.msk [vmem:[#allocation2 + $0x130] sm:$0xff] %vm968_vm1, %v1204_v3  ;;  %v1308_v8 = vld [vmem:[#allocation2 + $0xf0] sm:$0xff] }
 0x312   : > { %970 = vst.msk [vmem:[#allocation2 + $0x10] sm:$0xff] %vm968_vm1, %v965_v54  ;;  %v4519_v54 = vld [vmem:[#allocation2 + $0xb0] sm:$0xff] }
 0x313   : > { %1217 = vst.msk [vmem:[#allocation2 + $0x130] sm:$0xff] %vm978_vm4, %v4325_v22  ;;  %980 = vst.msk [vmem:[#allocation2 + $0x10] sm:$0xff] %vm978_vm4, %v4284_v31  ;;  %v4442_v22 = vld [vmem:[#allocation2 + $0x68] sm:$0xff] }
 0x315   : > { %v1011_v24 = vpop.permute.xlu0 %1010 }
 0x316   : > { %1057 = vst.msk [vmem:[#allocation2 + $0x40] sm:$0xff] %vm968_vm1, %v1011_v24  ;;  %v2748_v24 = vpack.c.bf16 %v1780_v60, %v1779_v58 }
 0x317   : > { %v1226_v1 = vld [vmem:[#allocation2] sm:$0xff]  ;;  %1121 = vst.msk [vmem:[#allocation2 + $0x40] sm:$0xff] %vm978_vm4, %v1112_v63 }
 0x318   : > { %1645 = vmatmul.mubr.f32.vlgmr.msra.gmra.mrb[0].mxu0 %v1226_v1  ;;  %v1782_v63 = vld [vmem:[#allocation14 + $0x238] sm:$0xff] }
 0x319   : > { %2393 = vmatprep.mubr.msk.f32.mxu0 %vm978_vm4, %v1229_v5  ;;  %2719 = vmatpush1.bf16.msra.mxu0 %v2718_v19  ;;  %v1015_v31 = vpop.permute.xlu0 %1014  ;;  %v1303_v19 = vld [vmem:[#allocation2 + $0xc8] sm:$0xff]  ;;  %v1305_v1 = vld [vmem:[#allocation2 + $0xd8] sm:$0xff]  ;;  %v2751_v5 = vpack.c.bf16 %v1782_v63, %v1781_v59 }
 0x31a   : > { %2720 = vmatprep.subr.bf16.mxu0 %v3457_v47  ;;  %1059 = vst.msk [vmem:[#allocation2 + $0x60] sm:$0xff] %vm968_vm1, %v1015_v31  ;;  %v1228_v18 = vld [vmem:[#allocation2 + $0x10] sm:$0xff]  ;;  %v1307_v31 = vld [vmem:[#allocation2 + $0xe8] sm:$0xff] }
 0x31b   : > { %1123 = vst.msk [vmem:[#allocation2 + $0x60] sm:$0xff] %vm978_vm4, %v1113_v15  ;;  %v1756_v30 = vld [vmem:[#allocation2 + $0x130] sm:$0xff] }
 0x31c   : > { %1650 = vmatmul.mubr.f32.gmra.mrb[2].mxu0 %v1228_v18  ;;  %v1309_v18 = vld [vmem:[#allocation2 + $0xf8] sm:$0xff] }
 0x31d   : > { %2394 = vmatprep.mubr.msk.f32.mxu0 %vm978_vm4, %v4139_v35  ;;  %2722 = vmatpush1.bf16.msra.mxu0 %v2721_v7  ;;  %v1019_v10 = vpop.permute.xlu0 %1018  ;;  %v4426_v35 = vld [vmem:[#allocation2 + $0x58] sm:$0xff]  ;;  %v1304_v7 = vld [vmem:[#allocation2 + $0xd0] sm:$0xff] }
 0x31e   : > { %2723 = vmatprep.subr.bf16.mxu0 %v3457_v47  ;;  %1061 = vst.msk [vmem:[#allocation2 + $0x80] sm:$0xff] %vm968_vm1, %v1019_v10  ;;  %v4421_v41 = vld [vmem:[#allocation2 + $0x40] sm:$0xff]  ;;  %v1313_v10 = vld [vmem:[#allocation2 + $0x118] sm:$0xff] }
 0x31f   : > { %1125 = vst.msk [vmem:[#allocation2 + $0x80] sm:$0xff] %vm978_vm4, %v1114_v38  ;;  %1462 = vmatmul.mubr.f32.gmra.mrb[24].mxu1 %v4421_v41 }
 0x320   : > { %1655 = vmatmul.mubr.f32.gmra.mrb[4].mxu0 %v4357_v42  ;;  %2379 = vmatprep.mubr.msk.f32.mxu1 %vm978_vm4, %v4426_v35  ;;  %v1774_v42 = vld [vmem:[#allocation14 + $0x1f8] sm:$0xff] }
 0x321   : > { %2395 = vmatprep.mubr.msk.f32.mxu0 %vm978_vm4, %v4362_v51  ;;  %v1023_v2 = vpop.permute.xlu0 %1022  ;;  %2725 = vmatpush1.bf16.msra.mxu0 %v2724_v12  ;;  %v4488_v51 = vld [vmem:[#allocation2 + $0x98] sm:$0xff]  ;;  %v1312_v12 = vld [vmem:[#allocation2 + $0x110] sm:$0xff] }
 0x322   : > { %1063 = vst.msk [vmem:[#allocation2 + $0xa0] sm:$0xff] %vm968_vm1, %v1023_v2  ;;  %2726 = vmatprep.subr.bf16.mxu0 %v3457_v47  ;;  %v4452_v56 = vld [vmem:[#allocation2 + $0x60] sm:$0xff] }
 0x323   : > { %1127 = vst.msk [vmem:[#allocation2 + $0xa0] sm:$0xff] %vm978_vm4, %v1115_v13  ;;  %1467 = vmatmul.mubr.f32.gmra.mrb[26].mxu1 %v4436_v17 }
 0x324   : > { %1660 = vmatmul.mubr.f32.gmra.mrb[6].mxu0 %v4367_v44  ;;  %2380 = vmatprep.mubr.msk.f32.mxu1 %vm978_vm4, %v4442_v22  ;;  %v2739_v44 = vpack.c.bf16 %v1774_v42, %v1773_v37 }
 0x325   : > { %2396 = vmatprep.mubr.msk.f32.mxu0 %vm978_vm4, %v4372_v0  ;;  %v1027_v11 = vpop.permute.xlu0 %1026  ;;  %2728 = vmatpush1.bf16.msra.mxu0 %v2727_v6 }
 0x326   : > { %1065 = vst.msk [vmem:[#allocation2 + $0xc0] sm:$0xff] %vm968_vm1, %v1027_v11  ;;  %2729 = vmatprep.subr.bf16.mxu0 %v3457_v47  ;;  %v4481_v36 = vld [vmem:[#allocation2 + $0x80] sm:$0xff] }
 0x327   : > { %1129 = vst.msk [vmem:[#allocation2 + $0xc0] sm:$0xff] %vm978_vm4, %v1116_v20  ;;  %1472 = vmatmul.mubr.f32.gmra.mrb[28].mxu1 %v4452_v56 }
 0x328   : > { %1665 = vmatmul.mubr.f32.gmra.mrb[8].mxu0 %v4421_v41  ;;  %2381 = vmatprep.mubr.msk.f32.mxu1 %vm978_vm4, %v4458_v27 }
 0x329   : > { %2397 = vmatprep.mubr.msk.f32.mxu0 %vm978_vm4, %v4426_v35  ;;  %v1031_v52 = vpop.permute.xlu0 %1030  ;;  %2731 = vmatpush1.bf16.msra.mxu0 %v2730_v28 }
 0x32a   : > { %1067 = vst.msk [vmem:[#allocation2 + $0xe0] sm:$0xff] %vm968_vm1, %v1031_v52  ;;  %2732 = vmatprep.subr.bf16.mxu0 %v3457_v47  ;;  %v4508_v53 = vld [vmem:[#allocation2 + $0xa0] sm:$0xff] }
 0x32b   : > { %1131 = vst.msk [vmem:[#allocation2 + $0xe0] sm:$0xff] %vm978_vm4, %v1117_v16  ;;  %1477 = vmatmul.mubr.f32.gmra.mrb[30].mxu1 %v4468_v29 }
 0x32c   : > { %1670 = vmatmul.mubr.f32.gmra.mrb[10].mxu0 %v4436_v17  ;;  %2382 = vmatprep.mubr.msk.f32.mxu1 %vm978_vm4, %v4474_v25 }
 0x32d   : > { %2398 = vmatprep.mubr.msk.f32.mxu0 %vm978_vm4, %v4442_v22  ;;  %v1035_v43 = vpop.permute.xlu0 %1034  ;;  %2734 = vmatpush1.bf16.msra.mxu0 %v2733_v57 }
 0x32e   : > { %1069 = vst.msk [vmem:[#allocation2 + $0x100] sm:$0xff] %vm968_vm1, %v1035_v43  ;;  %2735 = vmatprep.subr.bf16.mxu0 %v3457_v47  ;;  %v1302_v61 = vld [vmem:[#allocation2 + $0xc0] sm:$0xff] }
 0x32f   : > { %1133 = vst.msk [vmem:[#allocation2 + $0x100] sm:$0xff] %vm978_vm4, %v4317_v4  ;;  %1482 = vmatmul.mubr.f32.gmra.mrb[32].mxu1 %v4481_v36  ;;  %v1775_v4 = vld [vmem:[#allocation14 + $0x200] sm:$0xff] }
 0x330   : > { %1675 = vmatmul.mubr.f32.gmra.mrb[12].mxu0 %v4452_v56  ;;  %2383 = vmatprep.mubr.msk.f32.mxu1 %vm978_vm4, %v4488_v51  ;;  %v2742_v50 = vpack.c.bf16 %v1776_v48, %v1775_v4  ;;  %v4598_v48 = vld [vmem:[#allocation15] ss:$0 sm:$0xff] }
 0x331   : > { %2399 = vmatprep.mubr.msk.f32.mxu0 %vm978_vm4, %v4458_v27  ;;  %v1202_v55 = vpop.permute.xlu0 %1201  ;;  %2737 = vmatpush1.bf16.msra.mxu0 %v2736_v46 }
 0x332   : > { %1208 = vst.msk [vmem:[#allocation2 + $0x120] sm:$0xff] %vm968_vm1, %v1202_v55  ;;  %2738 = vmatprep.subr.bf16.mxu0 %v3457_v47  ;;  %v1306_v15 = vld [vmem:[#allocation2 + $0xe0] sm:$0xff] }
 0x333   : > { %1216 = vst.msk [vmem:[#allocation2 + $0x120] sm:$0xff] %vm978_vm4, %v4328_v14  ;;  %1487 = vmatmul.mubr.f32.gmra.mrb[34].mxu1 %v4495_v33  ;;  %v1778_v14 = vld [vmem:[#allocation14 + $0x218] sm:$0xff] }
 0x334   : > { %1680 = vmatmul.mubr.f32.gmra.mrb[14].mxu0 %v4468_v29  ;;  %2384 = vmatprep.mubr.msk.f32.mxu1 %vm978_vm4, %v4502_v49  ;;  %v2745_v3 = vpack.c.bf16 %v1778_v14, %v1777_v23 }
 0x335   : > { %2400 = vmatprep.mubr.msk.f32.mxu0 %vm978_vm4, %v4474_v25  ;;  %2740 = vmatpush1.bf16.msra.mxu0 %v2739_v44 }
 0x336   : > { %2741 = vmatprep.subr.bf16.mxu0 %v3457_v47  ;;  %v1310_v9 = vld [vmem:[#allocation2 + $0x100] sm:$0xff] }
 0x337   : > { %1492 = vmatmul.mubr.f32.gmra.mrb[36].mxu1 %v4508_v53 }
 0x338   : > { %1685 = vmatmul.mubr.f32.gmra.mrb[16].mxu0 %v4481_v36  ;;  %2385 = vmatprep.mubr.msk.f32.mxu1 %vm978_vm4, %v4513_v45 }
 0x339   : > { %2401 = vmatprep.mubr.msk.f32.mxu0 %vm978_vm4, %v4488_v51  ;;  %2743 = vmatpush1.bf16.msra.mxu0 %v2742_v50 }
 0x33a   : > { %2744 = vmatprep.subr.bf16.mxu0 %v3457_v47  ;;  %v1754_v38 = vld [vmem:[#allocation2 + $0x120] sm:$0xff] }
 0x33b   : > { %1497 = vmatmul.mubr.f32.gmra.mrb[38].mxu1 %v4519_v54 }
 0x33c   : > { %1690 = vmatmul.mubr.f32.gmra.mrb[18].mxu0 %v4495_v33  ;;  %2386 = vmatprep.mubr.msk.f32.mxu1 %vm978_vm4, %v1303_v19 }
 0x33d   : > { %2402 = vmatprep.mubr.msk.f32.mxu0 %vm978_vm4, %v4502_v49  ;;  %2746 = vmatpush1.bf16.msra.mxu0 %v2745_v3 }
 0x33e   : > { %2747 = vmatprep.subr.bf16.mxu0 %v3457_v47 }
 0x33f   : > { %1502 = vmatmul.mubr.f32.gmra.mrb[40].mxu1 %v1302_v61 }
 0x340   : > { %1695 = vmatmul.mubr.f32.gmra.mrb[20].mxu0 %v4508_v53  ;;  %2387 = vmatprep.mubr.msk.f32.mxu1 %vm978_vm4, %v1305_v1 }
 0x341   : > { %2403 = vmatprep.mubr.msk.f32.mxu0 %vm978_vm4, %v4513_v45  ;;  %2749 = vmatpush1.bf16.msra.mxu0 %v2748_v24 }
 0x342   : > { %2750 = vmatprep.subr.bf16.mxu0 %v3457_v47  ;;  %v1311_v47 = vld [vmem:[#allocation2 + $0x108] sm:$0xff] }
 0x343   : > { %1507 = vmatmul.mubr.f32.gmra.mrb[42].mxu1 %v1304_v7 }
 0x344   : > { %1700 = vmatmul.mubr.f32.gmra.mrb[22].mxu0 %v4519_v54  ;;  %2388 = vmatprep.mubr.msk.f32.mxu1 %vm978_vm4, %v1307_v31 }
 0x345   : > { %2404 = vmatprep.mubr.msk.f32.mxu0 %vm978_vm4, %v1303_v19  ;;  %2752 = vmatpush1.bf16.msra.mxu0 %v2751_v5 }
 0x347   : > { %1512 = vmatmul.mubr.f32.gmra.mrb[44].mxu1 %v1306_v15 }
 0x348   : > { %1705 = vmatmul.mubr.f32.gmra.mrb[24].mxu0 %v1302_v61  ;;  %2389 = vmatprep.mubr.msk.f32.mxu1 %vm978_vm4, %v1309_v18 }
 0x349   : > { %2405 = vmatprep.mubr.msk.f32.mxu0 %vm978_vm4, %v1305_v1 }
 0x34b   : > { %1517 = vmatmul.mubr.f32.gmra.mrb[46].mxu1 %v1308_v8 }
 0x34c   : > { %1710 = vmatmul.mubr.f32.gmra.mrb[26].mxu0 %v1304_v7  ;;  %2390 = vmatprep.mubr.msk.f32.mxu1 %vm978_vm4, %v1311_v47 }
 0x34d   : > { %2406 = vmatprep.mubr.msk.f32.mxu0 %vm978_vm4, %v1307_v31 }
 0x34f   : > { %1522 = vmatmul.mubr.f32.gmra.mrb[48].mxu1 %v1310_v9 }
 0x350   : > { %1715 = vmatmul.mubr.f32.gmra.mrb[28].mxu0 %v1306_v15  ;;  %2391 = vmatprep.mubr.msk.f32.mxu1 %vm978_vm4, %v1313_v10 }
 0x351   : > { %2407 = vmatprep.mubr.msk.f32.mxu0 %vm978_vm4, %v1309_v18 }
 0x353   : > { %1527 = vmatmul.mubr.f32.gmra.mrb[50].mxu1 %v1312_v12 }
 0x354   : > { %1720 = vmatmul.mubr.f32.gmra.mrb[30].mxu0 %v1308_v8 }
 0x355   : > { %2408 = vmatprep.mubr.msk.f32.mxu0 %vm978_vm4, %v4372_v0  ;;  %v1755_v0 = vld [vmem:[#allocation2 + $0x128] sm:$0xff] }
 0x358   : > { %1896 = vmatmul.mubr.f32.vlgmr.msra.gmra.mrb[0].mxu0 %v4421_v41  ;;  %v1757_v41 = vld [vmem:[#allocation2 + $0x138] sm:$0xff] }
 0x359   : > { %2409 = vmatprep.mubr.msk.f32.mxu0 %vm978_vm4, %v4426_v35 }
 0x35c   : > { %1901 = vmatmul.mubr.f32.gmra.mrb[2].mxu0 %v4436_v17 }
 0x35d   : > { %2410 = vmatprep.mubr.msk.f32.mxu0 %vm978_vm4, %v4442_v22 }
 0x360   : > { %1906 = vmatmul.mubr.f32.gmra.mrb[4].mxu0 %v4452_v56 }
 0x361   : > { %2411 = vmatprep.mubr.msk.f32.mxu0 %vm978_vm4, %v4458_v27 }
 0x364   : > { %1911 = vmatmul.mubr.f32.gmra.mrb[6].mxu0 %v4468_v29 }
 0x365   : > { %2412 = vmatprep.mubr.msk.f32.mxu0 %vm978_vm4, %v4474_v25 }
 0x368   : > { %1916 = vmatmul.mubr.f32.gmra.mrb[8].mxu0 %v4481_v36 }
 0x369   : > { %2413 = vmatprep.mubr.msk.f32.mxu0 %vm978_vm4, %v4488_v51 }
 0x36c   : > { %1921 = vmatmul.mubr.f32.gmra.mrb[10].mxu0 %v4495_v33 }
 0x36d   : > { %2414 = vmatprep.mubr.msk.f32.mxu0 %vm978_vm4, %v4502_v49 }
 0x370   : > { %1926 = vmatmul.mubr.f32.gmra.mrb[12].mxu0 %v4508_v53  ;;  %v4600_v53 = vld [vmem:[#allocation17] ss:$0 sm:$0xff] }
 0x371   : > { %2415 = vmatprep.mubr.msk.f32.mxu0 %vm978_vm4, %v4513_v45 }
 0x374   : > { %1931 = vmatmul.mubr.f32.gmra.mrb[14].mxu0 %v4519_v54 }
 0x375   : > { %2416 = vmatprep.mubr.msk.f32.mxu0 %vm978_vm4, %v1303_v19 }
 0x378   : > { %1936 = vmatmul.mubr.f32.gmra.mrb[16].mxu0 %v1302_v61 }
 0x379   : > { %2417 = vmatprep.mubr.msk.f32.mxu0 %vm978_vm4, %v1305_v1  ;;  %v3004_v1 = vld [vmem:[%s4016_s21] sm:$0xff] }
 0x37c   : > { %1941 = vmatmul.mubr.f32.gmra.mrb[18].mxu0 %v1304_v7 }
 0x37d   : > { %2418 = vmatprep.mubr.msk.f32.mxu0 %vm978_vm4, %v1307_v31 }
 0x380   : > { %1946 = vmatmul.mubr.f32.gmra.mrb[20].mxu0 %v1306_v15 }
 0x381   : > { %2419 = vmatprep.mubr.msk.f32.mxu0 %vm978_vm4, %v1309_v18 }
 0x384   : > { %1951 = vmatmul.mubr.f32.gmra.mrb[22].mxu0 %v1308_v8 }
 0x385   : > { %2420 = vmatprep.mubr.msk.f32.mxu0 %vm978_vm4, %v1311_v47 }
 0x388   : > { %1956 = vmatmul.mubr.f32.gmra.mrb[24].mxu0 %v1310_v9 }
 0x389   : > { %2421 = vmatprep.mubr.msk.f32.mxu0 %vm978_vm4, %v1313_v10  ;;  %v3005_v10 = vld [vmem:[%s4016_s21 + $0x8] sm:$0xff] }
 0x38c   : > { %1961 = vmatmul.mubr.f32.gmra.mrb[26].mxu0 %v1312_v12 }
 0x38d   : > { %2422 = vmatprep.mubr.msk.f32.mxu0 %vm978_vm4, %v1755_v0 }
 0x390   : > { %1966 = vmatmul.mubr.f32.gmra.mrb[28].mxu0 %v1754_v38 }
 0x391   : > { %2423 = vmatprep.mubr.msk.f32.mxu0 %vm978_vm4, %v1757_v41 }
 0x394   : > { %1971 = vmatmul.mubr.f32.gmra.mrb[30].mxu0 %v1756_v30 }
 0x3c9   : > { %v1453_v39 = vpop.f32.mrb[20].mxu1 }
 0x3ca   : > { %v1455_v35 = vpop.f32.mrb[21].mxu1 }
 0x3cd   : > { %v1458_v2 = vpop.f32.mrb[22].mxu1 }
 0x3ce   : > { %v1460_v6 = vpop.f32.mrb[23].mxu1 }
 0x3cf   : > { %v3006_v6 = vld [vmem:[%s4016_s21 + $0x10] sm:$0xff] }
 0x3f2   : > { %v1463_v13 = vpop.f32.mrb[24].mxu1 }
 0x3f3   : > { %v1465_v17 = vpop.f32.mrb[25].mxu1 }
 0x3f6   : > { %v1468_v21 = vpop.f32.mrb[26].mxu1 }
 0x3f7   : > { %v1470_v40 = vpop.f32.mrb[27].mxu1 }
 0x3fa   : > { %v4574_v22 = vpop.f32.mrb[28].mxu1 }
 0x3fb   : > { %v1475_v11 = vpop.f32.mrb[29].mxu1 }
 0x3fe   : > { %v4576_v28 = vpop.f32.mrb[30].mxu1 }
 0x3ff   : > { %v1480_v20 = vpop.f32.mrb[31].mxu1 }
 0x402   : > { %v4578_v56 = vpop.f32.mrb[32].mxu1 }
 0x403   : > { %v1485_v62 = vpop.f32.mrb[33].mxu1 }
 0x406   : > { %v4580_v26 = vpop.f32.mrb[34].mxu1 }
 0x407   : > { %v1490_v27 = vpop.f32.mrb[35].mxu1 }
 0x40a   : > { %v4582_v52 = vpop.f32.mrb[36].mxu1 }
 0x40b   : > { %v1495_v57 = vpop.f32.mrb[37].mxu1 }
 0x40c   : > { %v3007_v57 = vld [vmem:[%s4016_s21 + $0x18] sm:$0xff] }
 0x40e   : > { %v4584_v16 = vpop.f32.mrb[38].mxu1 }
 0x40f   : > { %v1500_v29 = vpop.f32.mrb[39].mxu1 }
 0x412   : > { %v4586_v32 = vpop.f32.mrb[40].mxu1 }
 0x413   : > { %v1505_v34 = vpop.f32.mrb[41].mxu1 }
 0x416   : > { %v4588_v25 = vpop.f32.mrb[42].mxu1 }
 0x417   : > { %v1510_v43 = vpop.f32.mrb[43].mxu1 }
 0x41a   : > { %v4590_v46 = vpop.f32.mrb[44].mxu1 }
 0x41b   : > { %v1515_v36 = vpop.f32.mrb[45].mxu1 }
 0x41e   : > { %v4592_v37 = vpop.f32.mrb[46].mxu1 }
 0x41f   : > { %v1520_v42 = vpop.f32.mrb[47].mxu1 }
 0x422   : > { %v4594_v51 = vpop.f32.mrb[48].mxu1 }
 0x423   : > { %v1525_v55 = vpop.f32.mrb[49].mxu1 }
 0x426   : > { %v4596_v44 = vpop.f32.mrb[50].mxu1 }
 0x427   : > { %v1530_v33 = vpop.f32.mrb[51].mxu1 }
 0x42b   : > { %v1897_v4 = vpop.f32.mrb[0].mxu0 }
 0x42c   : > { %v2753_v49 = vadd.f32 %v1897_v4, %v1453_v39  ;;  %v1899_v50 = vpop.f32.mrb[1].mxu0  ;;  %v3008_v4 = vld [vmem:[%s4016_s21 + $0x20] sm:$0xff] }
 0x42e   : > { %v1999_v23 = vmul.f32 %v2753_v49, %v4598_v48 }
 0x42f   : > { %v1902_v14 = vpop.f32.mrb[2].mxu0 }
 0x430   : > { %v2022_v45 = vadd.f32 %v4600_v53, %v1999_v23  ;;  %v2754_v3 = vadd.f32 %v1902_v14, %v1458_v2  ;;  %v1904_v54 = vpop.f32.mrb[3].mxu0 }
 0x432   : > { %vm2038_vm3 = vcmp.gt.f32.partialorder %v2022_v45, 0.0  ;;  %v2054_v58 = vmul.f32 0.1, %v2022_v45  ;;  %v2000_v60 = vmul.f32 %v2754_v3, %v4598_v48 }
 0x433   : > { %v1907_v19 = vpop.f32.mrb[4].mxu0 }
 0x434   : > { %v2070_v24 = vsel %vm2038_vm3, %v2022_v45, %v2054_v58  ;;  %v2023_v61 = vadd.f32 %v4600_v53, %v2000_v60  ;;  %v2755_v59 = vadd.f32 %v1907_v19, %v1463_v13  ;;  %v1909_v63 = vpop.f32.mrb[5].mxu0  ;;  %v3009_v58 = vld [vmem:[%s4016_s21 + $0x28] sm:$0xff] }
 0x435   : > { %v2086_v5 = vadd.f32 %v3004_v1, %v2070_v24 }
 0x436   : > { %vm2039_vm4 = vcmp.gt.f32.partialorder %v2023_v61, 0.0  ;;  %v2055_v7 = vmul.f32 0.1, %v2023_v61  ;;  %v2001_v31 = vmul.f32 %v2755_v59, %v4598_v48 }
 0x437   : > { %2102 = vst [vmem:[%s4609_s30] sm:$0xff] %v2086_v5  ;;  %v1912_v15 = vpop.f32.mrb[6].mxu0  ;;  %v3010_v5 = vld [vmem:[%s4016_s21 + $0x30] sm:$0xff] }
 0x438   : > { %v2071_v18 = vsel %vm2039_vm4, %v2023_v61, %v2055_v7  ;;  %v2024_v8 = vadd.f32 %v4600_v53, %v2001_v31  ;;  %v2756_v47 = vadd.f32 %v1912_v15, %v1468_v21  ;;  %v1914_v9 = vpop.f32.mrb[7].mxu0 }
 0x439   : > { %v2087_v12 = vadd.f32 %v3005_v10, %v2071_v18  ;;  %v3011_v10 = vld [vmem:[%s4016_s21 + $0x38] sm:$0xff] }
 0x43a   : > { %vm2040_vm12 = vcmp.gt.f32.partialorder %v2024_v8, 0.0  ;;  %v2056_v0 = vmul.f32 0.1, %v2024_v8  ;;  %v2002_v38 = vmul.f32 %v2756_v47, %v4598_v48 }
 0x43b   : > { %2103 = vst [vmem:[%s4609_s30 + $0x8] sm:$0xff] %v2087_v12  ;;  %v1917_v41 = vpop.f32.mrb[8].mxu0 }
 0x43c   : > { %v2072_v30 = vsel %vm2040_vm12, %v2024_v8, %v2056_v0  ;;  %v2025_v39 = vadd.f32 %v4600_v53, %v2002_v38  ;;  %v2757_v35 = vadd.f32 %v1917_v41, %v4574_v22  ;;  %v1919_v2 = vpop.f32.mrb[9].mxu0 }
 0x43d   : > { %v2088_v13 = vadd.f32 %v3006_v6, %v2072_v30  ;;  %v3012_v2 = vld [vmem:[%s4016_s21 + $0x40] sm:$0xff] }
 0x43e   : > { %vm2041_vm13 = vcmp.gt.f32.partialorder %v2025_v39, 0.0  ;;  %v2057_v17 = vmul.f32 0.1, %v2025_v39  ;;  %v2003_v21 = vmul.f32 %v2757_v35, %v4598_v48 }
 0x43f   : > { %2104 = vst [vmem:[%s4609_s30 + $0x10] sm:$0xff] %v2088_v13  ;;  %v1922_v40 = vpop.f32.mrb[10].mxu0 }
 0x440   : > { %v2073_v11 = vsel %vm2041_vm13, %v2025_v39, %v2057_v17  ;;  %v2026_v20 = vadd.f32 %v4600_v53, %v2003_v21  ;;  %v2758_v62 = vadd.f32 %v1922_v40, %v4576_v28  ;;  %v1924_v27 = vpop.f32.mrb[11].mxu0 }
 0x441   : > { %v2089_v22 = vadd.f32 %v3007_v57, %v2073_v11 }
 0x442   : > { %vm2042_vm14 = vcmp.gt.f32.partialorder %v2026_v20, 0.0  ;;  %v2058_v29 = vmul.f32 0.1, %v2026_v20  ;;  %v2004_v34 = vmul.f32 %v2758_v62, %v4598_v48  ;;  %v3013_v62 = vld [vmem:[%s4016_s21 + $0x48] sm:$0xff] }
 0x443   : > { %2105 = vst [vmem:[%s4609_s30 + $0x18] sm:$0xff] %v2089_v22  ;;  %v1927_v43 = vpop.f32.mrb[12].mxu0 }
 0x444   : > { %v2074_v36 = vsel %vm2042_vm14, %v2026_v20, %v2058_v29  ;;  %v2027_v42 = vadd.f32 %v4600_v53, %v2004_v34  ;;  %v2759_v55 = vadd.f32 %v1927_v43, %v4578_v56  ;;  %v1929_v33 = vpop.f32.mrb[13].mxu0 }
 0x445   : > { %v2090_v28 = vadd.f32 %v3008_v4, %v2074_v36 }
 0x446   : > { %vm2043_vm15 = vcmp.gt.f32.partialorder %v2027_v42, 0.0  ;;  %v2059_v49 = vmul.f32 0.1, %v2027_v42  ;;  %v2005_v50 = vmul.f32 %v2759_v55, %v4598_v48 }
 0x447   : > { %2106 = vst [vmem:[%s4609_s30 + $0x20] sm:$0xff] %v2090_v28  ;;  %v1932_v23 = vpop.f32.mrb[14].mxu0 }
 0x448   : > { %v2075_v14 = vsel %vm2043_vm15, %v2027_v42, %v2059_v49  ;;  %v2028_v45 = vadd.f32 %v4600_v53, %v2005_v50  ;;  %v2760_v3 = vadd.f32 %v1932_v23, %v4580_v26  ;;  %v1934_v54 = vpop.f32.mrb[15].mxu0  ;;  %v3014_v42 = vld [vmem:[%s4016_s21 + $0x50] sm:$0xff] }
 0x449   : > { %v2091_v56 = vadd.f32 %v3009_v58, %v2075_v14  ;;  %v3015_v14 = vld [vmem:[%s4016_s21 + $0x58] sm:$0xff] }
 0x44a   : > { %vm2044_vm0 = vcmp.gt.f32.partialorder %v2028_v45, 0.0  ;;  %v2060_v60 = vmul.f32 0.1, %v2028_v45  ;;  %v2006_v19 = vmul.f32 %v2760_v3, %v4598_v48 }
 0x44b   : > { %2107 = vst [vmem:[%s4609_s30 + $0x28] sm:$0xff] %v2091_v56  ;;  %v1937_v24 = vpop.f32.mrb[16].mxu0 }
 0x44c   : > { %v2076_v61 = vsel %vm2044_vm0, %v2028_v45, %v2060_v60  ;;  %v2029_v59 = vadd.f32 %v4600_v53, %v2006_v19  ;;  %v2761_v63 = vadd.f32 %v1937_v24, %v4582_v52  ;;  %v1939_v1 = vpop.f32.mrb[17].mxu0 }
 0x44d   : > { %v2092_v26 = vadd.f32 %v3010_v5, %v2076_v61 }
 0x44e   : > { %vm2045_vm2 = vcmp.gt.f32.partialorder %v2029_v59, 0.0  ;;  %v2061_v7 = vmul.f32 0.1, %v2029_v59  ;;  %v2007_v31 = vmul.f32 %v2761_v63, %v4598_v48 }
 0x44f   : > { %2108 = vst [vmem:[%s4609_s30 + $0x30] sm:$0xff] %v2092_v26  ;;  %v1942_v15 = vpop.f32.mrb[18].mxu0 }
 0x450   : > { %v2077_v18 = vsel %vm2045_vm2, %v2029_v59, %v2061_v7  ;;  %v2030_v8 = vadd.f32 %v4600_v53, %v2007_v31  ;;  %v2762_v47 = vadd.f32 %v1942_v15, %v4584_v16  ;;  %v1944_v9 = vpop.f32.mrb[19].mxu0 }
 0x451   : > { %v2093_v52 = vadd.f32 %v3011_v10, %v2077_v18  ;;  %v3018_v9 = vld [vmem:[%s4016_s21 + $0x70] sm:$0xff] }
 0x452   : > { %vm2046_vm5 = vcmp.gt.f32.partialorder %v2030_v8, 0.0  ;;  %v2062_v12 = vmul.f32 0.1, %v2030_v8  ;;  %v2008_v0 = vmul.f32 %v2762_v47, %v4598_v48 }
 0x453   : > { %2109 = vst [vmem:[%s4609_s30 + $0x38] sm:$0xff] %v2093_v52  ;;  %v1947_v38 = vpop.f32.mrb[20].mxu0 }
 0x454   : > { %v2078_v41 = vsel %vm2046_vm5, %v2030_v8, %v2062_v12  ;;  %v2031_v30 = vadd.f32 %v4600_v53, %v2008_v0  ;;  %v2763_v39 = vadd.f32 %v1947_v38, %v4586_v32  ;;  %v1949_v35 = vpop.f32.mrb[21].mxu0 }
 0x455   : > { %v2094_v16 = vadd.f32 %v3012_v2, %v2078_v41 }
 0x456   : > { %vm2047_vm6 = vcmp.gt.f32.partialorder %v2031_v30, 0.0  ;;  %v2063_v6 = vmul.f32 0.1, %v2031_v30  ;;  %v2009_v13 = vmul.f32 %v2763_v39, %v4598_v48 }
 0x457   : > { %2110 = vst [vmem:[%s4609_s30 + $0x40] sm:$0xff] %v2094_v16  ;;  %v1952_v17 = vpop.f32.mrb[22].mxu0 }
 0x458   : > { %v2079_v21 = vsel %vm2047_vm6, %v2031_v30, %v2063_v6  ;;  %v2032_v40 = vadd.f32 %v4600_v53, %v2009_v13  ;;  %v2764_v11 = vadd.f32 %v1952_v17, %v4588_v25  ;;  %v1954_v20 = vpop.f32.mrb[23].mxu0 }
 0x459   : > { %v2095_v32 = vadd.f32 %v3013_v62, %v2079_v21 }
 0x45a   : > { %vm2048_vm7 = vcmp.gt.f32.partialorder %v2032_v40, 0.0  ;;  %v2064_v27 = vmul.f32 0.1, %v2032_v40  ;;  %v2010_v57 = vmul.f32 %v2764_v11, %v4598_v48 }
 0x45b   : > { %2111 = vst [vmem:[%s4609_s30 + $0x48] sm:$0xff] %v2095_v32  ;;  %v1957_v22 = vpop.f32.mrb[24].mxu0 }
 0x45c   : > { %v2080_v29 = vsel %vm2048_vm7, %v2032_v40, %v2064_v27  ;;  %v2033_v34 = vadd.f32 %v4600_v53, %v2010_v57  ;;  %v2765_v43 = vadd.f32 %v1957_v22, %v4590_v46  ;;  %v1959_v36 = vpop.f32.mrb[25].mxu0 }
 0x45d   : > { %v2096_v25 = vadd.f32 %v3014_v42, %v2080_v29 }
 0x45e   : > { %vm2049_vm8 = vcmp.gt.f32.partialorder %v2033_v34, 0.0  ;;  %v2065_v55 = vmul.f32 0.1, %v2033_v34  ;;  %v2011_v33 = vmul.f32 %v2765_v43, %v4598_v48 }
 0x45f   : > { %2112 = vst [vmem:[%s4609_s30 + $0x50] sm:$0xff] %v2096_v25  ;;  %v1962_v4 = vpop.f32.mrb[26].mxu0 }
 0x460   : > { %v2081_v28 = vsel %vm2049_vm8, %v2033_v34, %v2065_v55  ;;  %v2034_v49 = vadd.f32 %v4600_v53, %v2011_v33  ;;  %v2766_v50 = vadd.f32 %v1962_v4, %v4592_v37  ;;  %v1964_v23 = vpop.f32.mrb[27].mxu0  ;;  %v3016_v37 = vld [vmem:[%s4016_s21 + $0x60] sm:$0xff] }
 0x461   : > { %v2097_v46 = vadd.f32 %v3015_v14, %v2081_v28 }
 0x462   : > { %vm2050_vm9 = vcmp.gt.f32.partialorder %v2034_v49, 0.0  ;;  %v2066_v45 = vmul.f32 0.1, %v2034_v49  ;;  %v2012_v3 = vmul.f32 %v2766_v50, %v4598_v48 }
 0x463   : > { %2113 = vst [vmem:[%s4609_s30 + $0x58] sm:$0xff] %v2097_v46  ;;  %v1967_v54 = vpop.f32.mrb[28].mxu0 }
 0x464   : > { %v2082_v58 = vsel %vm2050_vm9, %v2034_v49, %v2066_v45  ;;  %v2035_v56 = vadd.f32 %v4600_v53, %v2012_v3  ;;  %v2767_v60 = vadd.f32 %v1967_v54, %v4594_v51  ;;  %v1969_v19 = vpop.f32.mrb[29].mxu0  ;;  %v3017_v51 = vld [vmem:[%s4016_s21 + $0x68] sm:$0xff] }
 0x465   : > { %v2098_v24 = vadd.f32 %v3016_v37, %v2082_v58 }
 0x466   : > { %vm2051_vm10 = vcmp.gt.f32.partialorder %v2035_v56, 0.0  ;;  %v2067_v61 = vmul.f32 0.1, %v2035_v56  ;;  %v2013_v59 = vmul.f32 %v2767_v60, %v4598_v48 }
 0x467   : > { %2114 = vst [vmem:[%s4609_s30 + $0x60] sm:$0xff] %v2098_v24  ;;  %v1972_v63 = vpop.f32.mrb[30].mxu0 }
 0x468   : > { %v2083_v1 = vsel %vm2051_vm10, %v2035_v56, %v2067_v61  ;;  %v2036_v5 = vadd.f32 %v4600_v53, %v2013_v59  ;;  %v2768_v26 = vadd.f32 %v1972_v63, %v4596_v44  ;;  %v1974_v7 = vpop.f32.mrb[31].mxu0 }
 0x469   : > { %v2099_v31 = vadd.f32 %v3017_v51, %v2083_v1 }
 0x46a   : > { %vm2052_vm11 = vcmp.gt.f32.partialorder %v2036_v5, 0.0  ;;  %v2068_v15 = vmul.f32 0.1, %v2036_v5  ;;  %v2014_v18 = vmul.f32 %v2768_v26, %v4598_v48  ;;  %v3019_v48 = vld [vmem:[%s4016_s21 + $0x78] sm:$0xff] }
 0x46b   : > { %2115 = vst [vmem:[%s4609_s30 + $0x68] sm:$0xff] %v2099_v31 }
 0x46c   : > { %v2084_v8 = vsel %vm2052_vm11, %v2036_v5, %v2068_v15  ;;  %v2037_v47 = vadd.f32 %v4600_v53, %v2014_v18 }
 0x46d   : > { %v2100_v44 = vadd.f32 %v3018_v9, %v2084_v8 }
 0x46e   : > { %vm2053_vm1 = vcmp.gt.f32.partialorder %v2037_v47, 0.0  ;;  %v2069_v10 = vmul.f32 0.1, %v2037_v47 }
 0x46f   : > { %2116 = vst [vmem:[%s4609_s30 + $0x70] sm:$0xff] %v2100_v44 }
 0x470   : > { %v2085_v52 = vsel %vm2053_vm1, %v2037_v47, %v2069_v10 }
 0x471   : > { %v2101_v12 = vadd.f32 %v3019_v48, %v2085_v52 }
 0x473   : > { %2117 = vst [vmem:[%s4609_s30 + $0x78] sm:$0xff] %v2101_v12 }
 0x474   : > { %3291 = shalt.err (!%p3288_p12)
}
 0x475   : > { %s3292_s5 = scalar_lea.hbm %s4688_s7, 2048  ;;  %s3296_s2 = scalar_lea.hbm %s4896_s9, 8192 }
 0x476   : > { %p3293_p11 = scmp.ne.s32.totalorder %s4688_s7, %s3292_s5  ;;  %p3297_p7 = scmp.lt.u32.totalorder %s4688_s7, %s4896_s9 }
 0x477   : > { %p3298_p10 = scmp.lt.u32.totalorder %s3296_s2, %s3292_s5  ;;  %p3300_p4 = scmp.lt.u32.totalorder %s3292_s5, %s4688_s7 }
 0x478   : > { %p3294_p6 = pnand %p3293_p11, %p4897_p8 }
 0x479   : > { %p3299_p0 = por %p3298_p10, %p3297_p7 }
 0x47a   : > { %p3295_p5 = pneg %p3294_p6 }
 0x47b   : > { %p3301_p13 = por %p3300_p4, %p3299_p0 }
 0x47d   : > { %p3302_p1 = pnand %p3301_p13, %p3295_p5 }
 0x47f   : > { %3305 = shalt.err (!%p3302_p1)
}
 0x480   : > { %s3460_s30 = smov 128   ;;  %s3461_s16 = smov 8  }
 0x481   : > { %2831 = dma.vmem_to_hbm [thread:$0]  (%p4897_p8), %s4682_s20, 2048, %s4688_s7, %s4693_s8, %s3460_s30, %s3460_s30, %s3461_s16  }
 0x482 PF: > { %s4898_s19 = sld [smem:[#allocation29_spill]]  ;;  %s4899_s15 = sld [smem:[#allocation39_spill]] }
 0x483   : > { %p2879_p3 = scmp.ge.s32.totalorder %s3444_s22, 2 }
 0x488   : > { %s2150_s0 = sand.u32 1, %s4898_s19   ;;  %p4900_p2 = scmp.ne.s32.totalorder %s4899_s15, 0 }
 0x489   : > { %s2151_s29 = scalar_lea.sflag [#allocation5], %s2150_s0 }
 0x48a   : > { %p2863_p9 = pnand %p2879_p3, %p4900_p2 }
 0x48c   : > { %3387 = dma.done.wait (!%p2863_p9), %s2151_s29, 2048  }
 0x48d   : > { %3389 = vsyncadd (!%p2863_p9), %s2151_s29, 4294965248  ;;  %s31_s22 = sadd.s32 1, %s3444_s22   ;;  %s4902_s30 = sld [smem:[#allocation27_spill]] }
 0x48e   : > { %p4722_p12 = scmp.ge.s32.totalorder %s31_s22, 6   ;;  %s4903_s10 = sld [smem:[#allocation28_spill]] }
 0x48f   : > { %s4904_s15 = sld [smem:[#allocation31_spill]]  ;;  %s4905_s20 = sld [smem:[#allocation41_spill]] }
 0x490   : > { %s4906_s25 = sld [smem:[#allocation34_spill]]  ;;  %s4907_s19 = sld [smem:[#allocation35_spill]] }
 0x491   : > { %s4908_s7 = sld [smem:[#allocation37_spill]]  ;;  %s4909_s21 = sld [smem:[#allocation40_spill]] }
 0x492   : > { %s4910_s11 = smov %s4933_s3  ;;  %s4911_s12 = smov %s3408_s13 }
 0x493   : > { %s4912_s13 = smov %s3412_s14  ;;  %s4913_s14 = smov %s3876_s18 }
 0x494   : > { %s4914_s16 = smov %s3424_s17  ;;  %30 = sbr.rel (!%p4722_p12) target bundleno = 26 (0x1a), region = 154 }
 0x495   : > { %s4915_s17 = smov %s4905_s20 }
 0x496   : > { %s4916_s18 = smov %s4906_s25 }
 0x497   : > { %s4917_s20 = smov %s4908_s7 }
 0x49b   :  { %2156 = vsyncpa [#allocation4], 1 }
 0x49c   :  { %2158 = vsyncpa [#allocation4 + $0x1], 1 }
 0x49d   :  { %2159 = vsyncpa [#allocation7], 1 }
 0x49e   :  { %2161 = vsyncpa [#allocation7 + $0x1], 1 }
 0x49f   :  { %2162 = vsyncpa [#allocation10], 1 }
 0x4a0   :  { %2163 = vsyncpa [#allocation13], 1 }
 0x4a1   :  { %2164 = vsyncpa [#allocation16], 1 }
 0x4a2   :  { %2165 = vsyncpa [#allocation5], 1 }
 0x4a3   :  { %2167 = vsyncpa [#allocation5 + $0x1], 1 }

</bundles_post_ra>
